<compile_context>
chip_gen: v6e
topology: v6e:2x2x1
jax: 0.10.0
libtpu: 0.0.40
codegen_flags: <defaults>
</compile_context>

<pallas_src>
import jax
import jax.numpy as jnp
from jax.experimental import pallas as pl
from jax.experimental.pallas import tpu as pltpu


def mhfa_kernel(wlk_ref, wlv_ref,                 # SMEM scalar prefetch: (L,) f32
                x_ref,                            # (Bt, L, Tt, D) bf16
                wcv_ref,                          # (D, C) bf16   cmp_linear_v weight
                wka_ref,                          # (D, H) bf16   fused Wck @ Watt
                batt_ref,                         # (1, H) f32    fused bck@Watt + batt
                wfc_ref,                          # (H*C, O) or (H, C, O) bf16
                bfc_ref,                          # (1, O) f32    fused bfc + bcv-term
                out_ref,                          # (Bt, O) f32
                m_sc, l_sc, acc_sc):              # online-softmax state (VMEM)
    t_idx = pl.program_id(1)
    n_t = pl.num_programs(1)

    bt, L, tt, D = x_ref.shape
    C = wcv_ref.shape[1]
    H = wka_ref.shape[1]
    O = bfc_ref.shape[1]

    @pl.when(t_idx == 0)
    def _init():
        m_sc[...] = jnp.full_like(m_sc, -jnp.inf)
        l_sc[...] = jnp.zeros_like(l_sc)
        acc_sc[...] = jnp.zeros_like(acc_sc)

    # --- SUPERB layer pooling: single fused sweep over L (each x[l] tile is
    # loaded once and feeds BOTH accumulators).  Multiplies in bf16 (packed on
    # v7x's VPU), running sums in f32 (accuracy; safe on v5e's bf16-less VPU).
    x0 = x_ref[:, 0]                                              # (Bt, Tt, D) bf16
    pooled_k = (wlk_ref[0].astype(jnp.bfloat16) * x0).astype(jnp.float32)
    pooled_v = (wlv_ref[0].astype(jnp.bfloat16) * x0).astype(jnp.float32)
    for l in range(1, L):                                         # L is small & static
        xl = x_ref[:, l]
        pooled_k = pooled_k + wlk_ref[l].astype(jnp.bfloat16) * xl
        pooled_v = pooled_v + wlv_ref[l].astype(jnp.bfloat16) * xl

    # Merge (Bt, Tt) leading dims (sublane-only reshape, no relayout).
    pk2 = pooled_k.reshape(bt * tt, D).astype(jnp.bfloat16)
    pv2 = pooled_v.reshape(bt * tt, D).astype(jnp.bfloat16)

    # --- Fused K-compression + attention head (one MXU matmul instead of two):
    #   att = (pk @ Wck + bck) @ Wa + ba == pk @ (Wck @ Wa) + (bck @ Wa + ba)
    att = jnp.dot(pk2, wka_ref[...],
                  preferred_element_type=jnp.float32) + batt_ref[...]   # (Bt*Tt, H)
    # V compression (bias folded into the pooling_fc bias outside the kernel).
    v = jnp.dot(pv2, wcv_ref[...],
                preferred_element_type=jnp.float32)                     # (Bt*Tt, C)
    v3 = v.reshape(bt, tt, C).astype(jnp.bfloat16)                      # (Bt, Tt, C)

    # --- Online softmax over the (tiled) time axis, in lane-dense (H, Tt)
    # layout: one minor-dims (XLU) transpose, then max/exp/sum along lanes.
    att_t = jnp.swapaxes(att.reshape(bt, tt, H), 1, 2)                  # (Bt, H, Tt)
    m_prev = m_sc[...]                                                  # (Bt, H)
    m_new = jnp.maximum(m_prev, jnp.max(att_t, axis=-1))                # (Bt, H)
    alpha = jnp.exp(m_prev - m_new)                                     # (Bt, H)
    p_t = jnp.exp(att_t - m_new[:, :, None])                            # (Bt, H, Tt)
    l_sc[...] = alpha * l_sc[...] + jnp.sum(p_t, axis=-1)
    m_sc[...] = m_new

    # --- Factorized attentive pooling for this tile, as ONE batched MXU
    # contraction (canonical batched-matmul dim numbers) + one full-tile update:
    #   acc[b, h, c] += sum_t p[b, h, t] * v[b, t, c]
    pv_bhc = jnp.einsum("bht,btc->bhc", p_t.astype(jnp.bfloat16), v3,
                        preferred_element_type=jnp.float32)             # (Bt, H, C)
    acc_sc[...] = alpha[:, :, None] * acc_sc[...] + pv_bhc

    # --- Finalize: normalize + pooling_fc, only on the last time tile.
    @pl.when(t_idx == n_t - 1)
    def _finalize():
        inv_l = pl.reciprocal(l_sc[...], approx=True)                   # (Bt, H)
        pooled = acc_sc[...] * inv_l[:, :, None]                        # (Bt, H, C)
        pooled_bf = pooled.astype(jnp.bfloat16)
        if len(wfc_ref.shape) == 2:
            # C % 128 == 0: free lane-merge -> single (Bt, H*C) @ (H*C, O) matmul.
            flat = pooled_bf.reshape(bt, H * C)
            acc_o = jnp.dot(flat, wfc_ref[...], preferred_element_type=jnp.float32)
        else:
            # Small-C path: per-head accumulation avoids a cross-lane relayout
            # of pooled; runs once per batch tile so the cost is negligible.
            acc_o = jnp.zeros((bt, O), jnp.float32)
            for h in range(H):
                acc_o = acc_o + jnp.dot(pooled_bf[:, h, :], wfc_ref[h],
                                        preferred_element_type=jnp.float32)
        out_ref[...] = acc_o + bfc_ref[...]


def _pick_bt(B, bt):
    """Largest batch tile that divides B, fills sublanes (multiple of 8) and
    leaves >= 2 grid steps so ("parallel", ...) can feed both v7x TensorCores."""
    for cand in range(min(bt, B // 2), 0, -1):
        if B % cand == 0 and cand % 8 == 0:
            return cand
    return B  # degenerate small-batch fallback (single grid step)


def _pick_tt(T, tt, bt, L, D, budget_bytes):
    """Time tile: multiple of 16 (bf16 sublane packing) dividing T, shrunk until
    the dominant per-tile VMEM buffers fit the budget:
    2 pipeline buffers of the bf16 x block + the two f32 pooled intermediates."""
    if tt >= T or T % tt != 0 or tt % 16 != 0:
        tt = T

    def est(t):
        return 2 * bt * L * t * D * 2 + 2 * bt * t * D * 4

    while (tt > 16 and est(tt) > budget_bytes
           and (tt // 2) % 16 == 0 and T % (tt // 2) == 0):
        tt //= 2
    return tt


def mhfa_forward(x, params, *, bt=8, tt=256, vmem_limit_bytes=48 * 1024 * 1024):
    # Defaults are sized for v7x's 64 MiB/TC VMEM; on v5e/v6e (128 MiB) pass
    # vmem_limit_bytes≈100 MiB and larger bt/tt to push DMA toward roofline.
    B, L, T, D = x.shape
    C = params["w_cmp_v"].shape[1]
    H = params["w_att"].shape[1]
    O = params["w_fc"].shape[1]

    bt = _pick_bt(B, bt)
    tt = _pick_tt(T, tt, bt, L, D, int(0.6 * vmem_limit_bytes))

    # SUPERB layer weights: softmax over the layer axis (parameter-only glue);
    # shipped to SMEM via scalar prefetch, read as scalars inside the kernel.
    wlk = jax.nn.softmax(params["layer_w_k"]).astype(jnp.float32)
    wlv = jax.nn.softmax(params["layer_w_v"]).astype(jnp.float32)

    bf16 = jnp.bfloat16
    f32 = jnp.float32
    x_bf = x.astype(bf16)

    # --- Parameter-only fusions (pure JAX, once per call).
    # K-compression folded into the attention head.
    w_ka = (params["w_cmp_k"] @ params["w_att"]).astype(bf16)            # (D, H)
    b_att_eff = (params["b_cmp_k"] @ params["w_att"]
                 + params["b_att"]).reshape(1, H).astype(f32)
    w_cv = params["w_cmp_v"].astype(bf16)                                # (D, C)
    # V-compression bias folded into the pooling_fc bias: softmax over time sums
    # to 1, so b_cv contributes the constant sum_{h,c} b_cv[c] * w_fc[h*C+c, :].
    w_fc_f32 = params["w_fc"].astype(bf16).astype(f32)                   # kernel-precision
    b_fc_eff = (params["b_fc"]
                + jnp.einsum("c,hco->o", params["b_cmp_v"],
                             w_fc_f32.reshape(H, C, O))).reshape(1, O).astype(f32)

    if C % 128 == 0:
        w_fc = params["w_fc"].astype(bf16)                 # (H*C, O): single finalize matmul
    else:
        w_fc = params["w_fc"].reshape(H, C, O).astype(bf16)  # per-head loop at finalize

    # Weights use constant index maps -> DMA'd once and stay VMEM-resident.
    # TODO(synk): pipeline_mode=pl.Buffered(1) here (or pl.ANY + one-time copy
    # for w_fc) would drop the unused second pipeline buffer on tight v7x budgets.
    def const_spec(shape):
        return pl.BlockSpec(shape, lambda b, t, *_: (0,) * len(shape))

    grid = (B // bt, T // tt)

    out = pl.pallas_call(
        mhfa_kernel,
        out_shape=jax.ShapeDtypeStruct((B, O), jnp.float32),
        grid_spec=pltpu.PrefetchScalarGridSpec(
            num_scalar_prefetch=2,                      # wlk, wlv -> SMEM
            grid=grid,
            in_specs=[
                pl.BlockSpec((bt, L, tt, D), lambda b, t, *_: (b, 0, t, 0)),  # x
                const_spec(w_cv.shape),          # cmp_linear_v weight
                const_spec(w_ka.shape),          # fused Wck @ Watt
                const_spec((1, H)),              # fused attention bias
                const_spec(w_fc.shape),          # pooling_fc weight
                const_spec((1, O)),              # fused pooling_fc bias
            ],
            out_specs=pl.BlockSpec((bt, O), lambda b, t, *_: (b, 0)),
            scratch_shapes=[
                pltpu.VMEM((bt, H), jnp.float32),       # running max
                pltpu.VMEM((bt, H), jnp.float32),       # running denom
                pltpu.VMEM((bt, H, C), jnp.float32),    # running numerator
            ],
        ),
        compiler_params=pltpu.CompilerParams(
            dimension_semantics=("parallel", "arbitrary"),   # batch || , time = reduction
            vmem_limit_bytes=vmem_limit_bytes,
        ),
    )(wlk, wlv, x_bf, w_cv, w_ka, b_att_eff, w_fc, b_fc_eff)
    return out


def mhfa_reference(x, params):
    """Pure-JAX reference mirroring the PyTorch forward (f32 math, no fusions)."""
    wlk = jax.nn.softmax(params["layer_w_k"])
    wlv = jax.nn.softmax(params["layer_w_v"])
    pk = jnp.einsum("bltd,l->btd", x, wlk)                 # (B, T, D)
    pv = jnp.einsum("bltd,l->btd", x, wlv)                 # (B, T, D)
    k = pk @ params["w_cmp_k"] + params["b_cmp_k"]         # (B, T, C)
    v = pv @ params["w_cmp_v"] + params["b_cmp_v"]         # (B, T, C)
    att = k @ params["w_att"] + params["b_att"]            # (B, T, H)
    att = jax.nn.softmax(att, axis=1)                      # softmax over time
    pooled = jnp.einsum("bth,btc->bhc", att, v)            # (B, H, C)
    flat = pooled.reshape(x.shape[0], -1)                  # (B, H*C)
    return flat @ params["w_fc"] + params["b_fc"]          # (B, O)


def make_params(key, L, D, C, H, O):
    ks = jax.random.split(key, 10)
    s = 0.05
    return {
        "layer_w_k": jax.random.normal(ks[0], (L,), jnp.float32),
        "layer_w_v": jax.random.normal(ks[1], (L,), jnp.float32),
        "w_cmp_k": s * jax.random.normal(ks[2], (D, C), jnp.float32),
        "b_cmp_k": s * jax.random.normal(ks[3], (C,), jnp.float32),
        "w_cmp_v": s * jax.random.normal(ks[4], (D, C), jnp.float32),
        "b_cmp_v": s * jax.random.normal(ks[5], (C,), jnp.float32),
        "w_att": s * jax.random.normal(ks[6], (C, H), jnp.float32),
        "b_att": s * jax.random.normal(ks[7], (H,), jnp.float32),
        "w_fc": s * jax.random.normal(ks[8], (H * C, O), jnp.float32),
        "b_fc": s * jax.random.normal(ks[9], (O,), jnp.float32),
    }


if __name__ == "__main__":
    # Small, module-consistent shapes:
    #   B=16 batch (Bt=8 per grid step -> grid[0]=2), L=5 layers
    #   (num_hidden_layers=4 + 1), T=32 frames (Tt=16 -> 2 time tiles exercise
    #   the online softmax), D=32 hidden, C=16 compression_dim, H=8 heads,
    #   O=32 outputs_dim.
    B, L, T, D = 16, 5, 32, 32
    C, H, O = 16, 8, 32

    key = jax.random.PRNGKey(0)
    kx, kp = jax.random.split(key)
    x = jax.random.normal(kx, (B, L, T, D), jnp.float32)
    params = make_params(kp, L, D, C, H, O)

    out = jax.block_until_ready(mhfa_forward(x, params, bt=8, tt=16))
    assert out.shape == (B, O), out.shape

    # Reference with the same bf16 quantization the kernel applies at the HBM
    # boundary (f32 math), so the diff only reflects in-kernel bf16 round-trips,
    # parameter fusions, online-softmax reassociation and the approx reciprocal.
    bf = lambda a: a.astype(jnp.bfloat16).astype(jnp.float32)
    qparams = dict(params)
    for name in ("w_cmp_k", "w_cmp_v", "w_att", "w_fc"):
        qparams[name] = bf(params[name])
    ref = mhfa_reference(bf(x), qparams)

    err = float(jnp.max(jnp.abs(out - ref)))
    assert jnp.allclose(out, ref, atol=5e-3, rtol=5e-2), f"mismatch: max abs err {err}"
    print("KERNEL_OK")
</pallas_src>

<mosaic_0001>
module attributes {stable_mosaic.version = 11 : i64} {
  func.func @mhfa_kernel(%arg0: i32, %arg1: i32, %arg2: memref<5xf32, #tpu.memory_space<smem>>, %arg3: memref<5xf32, #tpu.memory_space<smem>>, %arg4: memref<8x5x16x32xbf16, #tpu.memory_space<vmem>>, %arg5: memref<32x16xbf16, #tpu.memory_space<vmem>>, %arg6: memref<32x8xbf16, #tpu.memory_space<vmem>>, %arg7: memref<1x8xf32, #tpu.memory_space<vmem>>, %arg8: memref<8x16x32xbf16, #tpu.memory_space<vmem>>, %arg9: memref<1x32xf32, #tpu.memory_space<vmem>>, %arg10: memref<8x32xf32, #tpu.memory_space<vmem>>, %arg11: memref<8x8xf32, #tpu.memory_space<vmem>>, %arg12: memref<8x8xf32, #tpu.memory_space<vmem>>, %arg13: memref<8x8x16xf32, #tpu.memory_space<vmem>>) attributes {dimension_semantics = [#tpu.dimension_semantics<parallel>, #tpu.dimension_semantics<arbitrary>], iteration_bounds = array<i64: 2, 2>, scalar_prefetch = 2 : i64, scratch_operands = 3 : i64, tpu.core_type = #tpu.core_type<tc>, window_params = [{transform_indices = @transform_0, window_bounds = array<i64: 8, 5, 16, 32>}, {pipeline_mode = #tpu.pipeline_mode<synchronous>, transform_indices = @transform_1, window_bounds = array<i64: 32, 16>}, {pipeline_mode = #tpu.pipeline_mode<synchronous>, transform_indices = @transform_2, window_bounds = array<i64: 32, 8>}, {pipeline_mode = #tpu.pipeline_mode<synchronous>, transform_indices = @transform_3, window_bounds = array<i64: 1, 8>}, {pipeline_mode = #tpu.pipeline_mode<synchronous>, transform_indices = @transform_4, window_bounds = array<i64: 8, 16, 32>}, {pipeline_mode = #tpu.pipeline_mode<synchronous>, transform_indices = @transform_5, window_bounds = array<i64: 1, 32>}, {transform_indices = @transform_6, window_bounds = array<i64: 8, 32>}]} {
    %c0_i32 = arith.constant 0 : i32
    %0 = arith.cmpi eq, %arg1, %c0_i32 : i32
    %1 = arith.extui %0 : i1 to i32
    %c0_i32_0 = arith.constant 0 : i32
    %2 = arith.cmpi ne, %1, %c0_i32_0 : i32
    scf.if %2 {
      %cst_51 = arith.constant 0xFF800000 : f32
      %112 = vector.broadcast %cst_51 : f32 to vector<8x8xf32>
      %c0_52 = arith.constant 0 : index
      %c0_53 = arith.constant 0 : index
      %113 = vector.load %arg11[%c0_52, %c0_53] : memref<8x8xf32, #tpu.memory_space<vmem>>, vector<8x8xf32>
      tpu.vector_store %arg11[%c0_52, %c0_53], %112 {strides = array<i32>} : memref<8x8xf32, #tpu.memory_space<vmem>>, vector<8x8xf32>,
      %cst_54 = arith.constant 0.000000e+00 : f32
      %114 = vector.broadcast %cst_54 : f32 to vector<8x8xf32>
      %c0_55 = arith.constant 0 : index
      %c0_56 = arith.constant 0 : index
      %115 = vector.load %arg12[%c0_55, %c0_56] : memref<8x8xf32, #tpu.memory_space<vmem>>, vector<8x8xf32>
      tpu.vector_store %arg12[%c0_55, %c0_56], %114 {strides = array<i32>} : memref<8x8xf32, #tpu.memory_space<vmem>>, vector<8x8xf32>,
      %cst_57 = arith.constant 0.000000e+00 : f32
      %116 = vector.broadcast %cst_57 : f32 to vector<8x8x16xf32>
      %c0_58 = arith.constant 0 : index
      %c0_59 = arith.constant 0 : index
      %c0_60 = arith.constant 0 : index
      %117 = vector.load %arg13[%c0_58, %c0_59, %c0_60] : memref<8x8x16xf32, #tpu.memory_space<vmem>>, vector<8x8x16xf32>
      tpu.vector_store %arg13[%c0_58, %c0_59, %c0_60], %116 {strides = array<i32>} : memref<8x8x16xf32, #tpu.memory_space<vmem>>, vector<8x8x16xf32>,
    } else {
    }
    %c0 = arith.constant 0 : index
    %c0_1 = arith.constant 0 : index
    %c0_2 = arith.constant 0 : index
    %c0_3 = arith.constant 0 : index
    %3 = vector.load %arg4[%c0, %c0_1, %c0_2, %c0_3] : memref<8x5x16x32xbf16, #tpu.memory_space<vmem>>, vector<8x1x16x32xbf16>
    %4 = vector.shape_cast %3 : vector<8x1x16x32xbf16> to vector<8x16x32xbf16>
    %c0_4 = arith.constant 0 : index
    %5 = memref.load %arg2[%c0_4] : memref<5xf32, #tpu.memory_space<smem>>
    %6 = arith.truncf %5 : f32 to bf16
    %7 = vector.broadcast %6 : bf16 to vector<8x16x32xbf16>
    %8 = arith.mulf %7, %4 : vector<8x16x32xbf16>
    %9 = arith.extf %8 : vector<8x16x32xbf16> to vector<8x16x32xf32>
    %c0_5 = arith.constant 0 : index
    %10 = memref.load %arg3[%c0_5] : memref<5xf32, #tpu.memory_space<smem>>
    %11 = arith.truncf %10 : f32 to bf16
    %12 = vector.broadcast %11 : bf16 to vector<8x16x32xbf16>
    %13 = arith.mulf %12, %4 : vector<8x16x32xbf16>
    %14 = arith.extf %13 : vector<8x16x32xbf16> to vector<8x16x32xf32>
    %c0_6 = arith.constant 0 : index
    %c1 = arith.constant 1 : index
    %c0_7 = arith.constant 0 : index
    %c0_8 = arith.constant 0 : index
    %15 = vector.load %arg4[%c0_6, %c1, %c0_7, %c0_8] : memref<8x5x16x32xbf16, #tpu.memory_space<vmem>>, vector<8x1x16x32xbf16>
    %16 = vector.shape_cast %15 : vector<8x1x16x32xbf16> to vector<8x16x32xbf16>
    %c1_9 = arith.constant 1 : index
    %17 = memref.load %arg2[%c1_9] : memref<5xf32, #tpu.memory_space<smem>>
    %18 = arith.truncf %17 : f32 to bf16
    %19 = vector.broadcast %18 : bf16 to vector<8x16x32xbf16>
    %20 = arith.mulf %19, %16 : vector<8x16x32xbf16>
    %21 = arith.extf %20 : vector<8x16x32xbf16> to vector<8x16x32xf32>
    %22 = arith.addf %9, %21 : vector<8x16x32xf32>
    %c1_10 = arith.constant 1 : index
    %23 = memref.load %arg3[%c1_10] : memref<5xf32, #tpu.memory_space<smem>>
    %24 = arith.truncf %23 : f32 to bf16
    %25 = vector.broadcast %24 : bf16 to vector<8x16x32xbf16>
    %26 = arith.mulf %25, %16 : vector<8x16x32xbf16>
    %27 = arith.extf %26 : vector<8x16x32xbf16> to vector<8x16x32xf32>
    %28 = arith.addf %14, %27 : vector<8x16x32xf32>
    %c0_11 = arith.constant 0 : index
    %c2 = arith.constant 2 : index
    %c0_12 = arith.constant 0 : index
    %c0_13 = arith.constant 0 : index
    %29 = vector.load %arg4[%c0_11, %c2, %c0_12, %c0_13] : memref<8x5x16x32xbf16, #tpu.memory_space<vmem>>, vector<8x1x16x32xbf16>
    %30 = vector.shape_cast %29 : vector<8x1x16x32xbf16> to vector<8x16x32xbf16>
    %c2_14 = arith.constant 2 : index
    %31 = memref.load %arg2[%c2_14] : memref<5xf32, #tpu.memory_space<smem>>
    %32 = arith.truncf %31 : f32 to bf16
    %33 = vector.broadcast %32 : bf16 to vector<8x16x32xbf16>
    %34 = arith.mulf %33, %30 : vector<8x16x32xbf16>
    %35 = arith.extf %34 : vector<8x16x32xbf16> to vector<8x16x32xf32>
    %36 = arith.addf %22, %35 : vector<8x16x32xf32>
    %c2_15 = arith.constant 2 : index
    %37 = memref.load %arg3[%c2_15] : memref<5xf32, #tpu.memory_space<smem>>
    %38 = arith.truncf %37 : f32 to bf16
    %39 = vector.broadcast %38 : bf16 to vector<8x16x32xbf16>
    %40 = arith.mulf %39, %30 : vector<8x16x32xbf16>
    %41 = arith.extf %40 : vector<8x16x32xbf16> to vector<8x16x32xf32>
    %42 = arith.addf %28, %41 : vector<8x16x32xf32>
    %c0_16 = arith.constant 0 : index
    %c3 = arith.constant 3 : index
    %c0_17 = arith.constant 0 : index
    %c0_18 = arith.constant 0 : index
    %43 = vector.load %arg4[%c0_16, %c3, %c0_17, %c0_18] : memref<8x5x16x32xbf16, #tpu.memory_space<vmem>>, vector<8x1x16x32xbf16>
    %44 = vector.shape_cast %43 : vector<8x1x16x32xbf16> to vector<8x16x32xbf16>
    %c3_19 = arith.constant 3 : index
    %45 = memref.load %arg2[%c3_19] : memref<5xf32, #tpu.memory_space<smem>>
    %46 = arith.truncf %45 : f32 to bf16
    %47 = vector.broadcast %46 : bf16 to vector<8x16x32xbf16>
    %48 = arith.mulf %47, %44 : vector<8x16x32xbf16>
    %49 = arith.extf %48 : vector<8x16x32xbf16> to vector<8x16x32xf32>
    %50 = arith.addf %36, %49 : vector<8x16x32xf32>
    %c3_20 = arith.constant 3 : index
    %51 = memref.load %arg3[%c3_20] : memref<5xf32, #tpu.memory_space<smem>>
    %52 = arith.truncf %51 : f32 to bf16
    %53 = vector.broadcast %52 : bf16 to vector<8x16x32xbf16>
    %54 = arith.mulf %53, %44 : vector<8x16x32xbf16>
    %55 = arith.extf %54 : vector<8x16x32xbf16> to vector<8x16x32xf32>
    %56 = arith.addf %42, %55 : vector<8x16x32xf32>
    %c0_21 = arith.constant 0 : index
    %c4 = arith.constant 4 : index
    %c0_22 = arith.constant 0 : index
    %c0_23 = arith.constant 0 : index
    %57 = vector.load %arg4[%c0_21, %c4, %c0_22, %c0_23] : memref<8x5x16x32xbf16, #tpu.memory_space<vmem>>, vector<8x1x16x32xbf16>
    %58 = vector.shape_cast %57 : vector<8x1x16x32xbf16> to vector<8x16x32xbf16>
    %c4_24 = arith.constant 4 : index
    %59 = memref.load %arg2[%c4_24] : memref<5xf32, #tpu.memory_space<smem>>
    %60 = arith.truncf %59 : f32 to bf16
    %61 = vector.broadcast %60 : bf16 to vector<8x16x32xbf16>
    %62 = arith.mulf %61, %58 : vector<8x16x32xbf16>
    %63 = arith.extf %62 : vector<8x16x32xbf16> to vector<8x16x32xf32>
    %64 = arith.addf %50, %63 : vector<8x16x32xf32>
    %c4_25 = arith.constant 4 : index
    %65 = memref.load %arg3[%c4_25] : memref<5xf32, #tpu.memory_space<smem>>
    %66 = arith.truncf %65 : f32 to bf16
    %67 = vector.broadcast %66 : bf16 to vector<8x16x32xbf16>
    %68 = arith.mulf %67, %58 : vector<8x16x32xbf16>
    %69 = arith.extf %68 : vector<8x16x32xbf16> to vector<8x16x32xf32>
    %70 = arith.addf %56, %69 : vector<8x16x32xf32>
    %71 = vector.shape_cast %64 : vector<8x16x32xf32> to vector<128x32xf32>
    %72 = arith.truncf %71 : vector<128x32xf32> to vector<128x32xbf16>
    %73 = vector.shape_cast %70 : vector<8x16x32xf32> to vector<128x32xf32>
    %74 = arith.truncf %73 : vector<128x32xf32> to vector<128x32xbf16>
    %c0_26 = arith.constant 0 : index
    %c0_27 = arith.constant 0 : index
    %75 = vector.load %arg6[%c0_26, %c0_27] : memref<32x8xbf16, #tpu.memory_space<vmem>>, vector<32x8xbf16>
    %cst = arith.constant dense<0.000000e+00> : vector<128x8xf32>
    %76 = tpu.matmul %72, %75, %cst {dimension_numbers = #tpu.dot_dimension_numbers<[1], [0], [0], [1], [0, 0, 1, 1], [], []>} : vector<128x32xbf16>, vector<32x8xbf16>, vector<128x8xf32> -> vector<128x8xf32>
    %c0_28 = arith.constant 0 : index
    %c0_29 = arith.constant 0 : index
    %77 = vector.load %arg7[%c0_28, %c0_29] : memref<1x8xf32, #tpu.memory_space<vmem>>, vector<1x8xf32>
    %78 = vector.broadcast %77 : vector<1x8xf32> to vector<128x8xf32>
    %79 = arith.addf %76, %78 : vector<128x8xf32>
    %c0_30 = arith.constant 0 : index
    %c0_31 = arith.constant 0 : index
    %80 = vector.load %arg5[%c0_30, %c0_31] : memref<32x16xbf16, #tpu.memory_space<vmem>>, vector<32x16xbf16>
    %cst_32 = arith.constant dense<0.000000e+00> : vector<128x16xf32>
    %81 = tpu.matmul %74, %80, %cst_32 {dimension_numbers = #tpu.dot_dimension_numbers<[1], [0], [0], [1], [0, 0, 1, 1], [], []>} : vector<128x32xbf16>, vector<32x16xbf16>, vector<128x16xf32> -> vector<128x16xf32>
    %82 = vector.shape_cast %81 : vector<128x16xf32> to vector<8x16x16xf32>
    %83 = arith.truncf %82 : vector<8x16x16xf32> to vector<8x16x16xbf16>
    %84 = vector.shape_cast %79 : vector<128x8xf32> to vector<8x16x8xf32>
    %85 = tpu.transpose %84, [0, 2, 1] : vector<8x16x8xf32> -> vector<8x8x16xf32>
    %c0_33 = arith.constant 0 : index
    %c0_34 = arith.constant 0 : index
    %86 = vector.load %arg11[%c0_33, %c0_34] : memref<8x8xf32, #tpu.memory_space<vmem>>, vector<8x8xf32>
    %cst_35 = arith.constant dense<0xFF800000> : vector<8x8xf32>
    %87 = vector.multi_reduction <maximumf>, %85, %cst_35 [2] : vector<8x8x16xf32> to vector<8x8xf32>
    %88 = arith.maximumf %86, %87 : vector<8x8xf32>
    %89 = arith.subf %86, %88 : vector<8x8xf32>
    %90 = math.exp %89 : vector<8x8xf32>
    %91 = vector.shape_cast %88 : vector<8x8xf32> to vector<8x8x1xf32>
    %92 = vector.broadcast %91 : vector<8x8x1xf32> to vector<8x8x16xf32>
    %93 = arith.subf %85, %92 : vector<8x8x16xf32>
    %94 = math.exp %93 : vector<8x8x16xf32>
    %c0_36 = arith.constant 0 : index
    %c0_37 = arith.constant 0 : index
    %95 = vector.load %arg12[%c0_36, %c0_37] : memref<8x8xf32, #tpu.memory_space<vmem>>, vector<8x8xf32>
    %96 = arith.mulf %90, %95 : vector<8x8xf32>
    %cst_38 = arith.constant dense<0.000000e+00> : vector<8x8xf32>
    %97 = vector.multi_reduction <add>, %94, %cst_38 [2] : vector<8x8x16xf32> to vector<8x8xf32>
    %98 = arith.addf %96, %97 : vector<8x8xf32>
    %c0_39 = arith.constant 0 : index
    %c0_40 = arith.constant 0 : index
    %99 = vector.load %arg12[%c0_39, %c0_40] : memref<8x8xf32, #tpu.memory_space<vmem>>, vector<8x8xf32>
    tpu.vector_store %arg12[%c0_39, %c0_40], %98 {strides = array<i32>} : memref<8x8xf32, #tpu.memory_space<vmem>>, vector<8x8xf32>,
    %c0_41 = arith.constant 0 : index
    %c0_42 = arith.constant 0 : index
    %100 = vector.load %arg11[%c0_41, %c0_42] : memref<8x8xf32, #tpu.memory_space<vmem>>, vector<8x8xf32>
    tpu.vector_store %arg11[%c0_41, %c0_42], %88 {strides = array<i32>} : memref<8x8xf32, #tpu.memory_space<vmem>>, vector<8x8xf32>,
    %101 = arith.truncf %94 : vector<8x8x16xf32> to vector<8x8x16xbf16>
    "tpu.trace_start"() <{level = 10 : i32, message = "bht,btc->bhc"}> : () -> ()
    %cst_43 = arith.constant dense<0.000000e+00> : vector<8x8x16xf32>
    %102 = tpu.matmul %101, %83, %cst_43 {dimension_numbers = #tpu.dot_dimension_numbers<[2], [1], [1], [2], [0, 0, 0, 1, 1, 2], [0], [0]>} : vector<8x8x16xbf16>, vector<8x16x16xbf16>, vector<8x8x16xf32> -> vector<8x8x16xf32>
    "tpu.trace_stop"() : () -> ()
    %103 = vector.shape_cast %90 : vector<8x8xf32> to vector<8x8x1xf32>
    %c0_44 = arith.constant 0 : index
    %c0_45 = arith.constant 0 : index
    %c0_46 = arith.constant 0 : index
    %104 = vector.load %arg13[%c0_44, %c0_45, %c0_46] : memref<8x8x16xf32, #tpu.memory_space<vmem>>, vector<8x8x16xf32>
    %105 = vector.broadcast %103 : vector<8x8x1xf32> to vector<8x8x16xf32>
    %106 = arith.mulf %105, %104 : vector<8x8x16xf32>
    %107 = arith.addf %106, %102 : vector<8x8x16xf32>
    %c0_47 = arith.constant 0 : index
    %c0_48 = arith.constant 0 : index
    %c0_49 = arith.constant 0 : index
    %108 = vector.load %arg13[%c0_47, %c0_48, %c0_49] : memref<8x8x16xf32, #tpu.memory_space<vmem>>, vector<8x8x16xf32>
    tpu.vector_store %arg13[%c0_47, %c0_48, %c0_49], %107 {strides = array<i32>} : memref<8x8x16xf32, #tpu.memory_space<vmem>>, vector<8x8x16xf32>,
    %c1_i32 = arith.constant 1 : i32
    %109 = arith.cmpi eq, %arg1, %c1_i32 : i32
    %110 = arith.extui %109 : i1 to i32
    %c0_i32_50 = arith.constant 0 : i32
    %111 = arith.cmpi ne, %110, %c0_i32_50 : i32
    scf.if %111 {
      %c0_51 = arith.constant 0 : index
      %c0_52 = arith.constant 0 : index
      %112 = vector.load %arg12[%c0_51, %c0_52] : memref<8x8xf32, #tpu.memory_space<vmem>>, vector<8x8xf32>
      %113 = tpu.reciprocal %112 {approx = true} : vector<8x8xf32> -> vector<8x8xf32>
      %c0_53 = arith.constant 0 : index
      %c0_54 = arith.constant 0 : index
      %c0_55 = arith.constant 0 : index
      %114 = vector.load %arg13[%c0_53, %c0_54, %c0_55] : memref<8x8x16xf32, #tpu.memory_space<vmem>>, vector<8x8x16xf32>
      %115 = vector.shape_cast %113 : vector<8x8xf32> to vector<8x8x1xf32>
      %116 = vector.broadcast %115 : vector<8x8x1xf32> to vector<8x8x16xf32>
      %117 = arith.mulf %114, %116 : vector<8x8x16xf32>
      %118 = arith.truncf %117 : vector<8x8x16xf32> to vector<8x8x16xbf16>
      %cst_56 = arith.constant 0.000000e+00 : f32
      %119 = vector.broadcast %cst_56 : f32 to vector<8x32xf32>
      %120 = vector.extract_strided_slice %118 {offsets = [0, 0, 0], sizes = [8, 1, 16], strides = [1, 1, 1]} : vector<8x8x16xbf16> to vector<8x1x16xbf16>
      %121 = vector.shape_cast %120 : vector<8x1x16xbf16> to vector<8x16xbf16>
      %c0_57 = arith.constant 0 : index
      %c0_58 = arith.constant 0 : index
      %c0_59 = arith.constant 0 : index
      %122 = vector.load %arg8[%c0_57, %c0_58, %c0_59] : memref<8x16x32xbf16, #tpu.memory_space<vmem>>, vector<1x16x32xbf16>
      %123 = vector.shape_cast %122 : vector<1x16x32xbf16> to vector<16x32xbf16>
      %cst_60 = arith.constant dense<0.000000e+00> : vector<8x32xf32>
      %124 = tpu.matmul %121, %123, %cst_60 {dimension_numbers = #tpu.dot_dimension_numbers<[1], [0], [0], [1], [0, 0, 1, 1], [], []>} : vector<8x16xbf16>, vector<16x32xbf16>, vector<8x32xf32> -> vector<8x32xf32>
      %125 = arith.addf %119, %124 : vector<8x32xf32>
      %126 = vector.extract_strided_slice %118 {offsets = [0, 1, 0], sizes = [8, 1, 16], strides = [1, 1, 1]} : vector<8x8x16xbf16> to vector<8x1x16xbf16>
      %127 = vector.shape_cast %126 : vector<8x1x16xbf16> to vector<8x16xbf16>
      %c1_61 = arith.constant 1 : index
      %c0_62 = arith.constant 0 : index
      %c0_63 = arith.constant 0 : index
      %128 = vector.load %arg8[%c1_61, %c0_62, %c0_63] : memref<8x16x32xbf16, #tpu.memory_space<vmem>>, vector<1x16x32xbf16>
      %129 = vector.shape_cast %128 : vector<1x16x32xbf16> to vector<16x32xbf16>
      %cst_64 = arith.constant dense<0.000000e+00> : vector<8x32xf32>
      %130 = tpu.matmul %127, %129, %cst_64 {dimension_numbers = #tpu.dot_dimension_numbers<[1], [0], [0], [1], [0, 0, 1, 1], [], []>} : vector<8x16xbf16>, vector<16x32xbf16>, vector<8x32xf32> -> vector<8x32xf32>
      %131 = arith.addf %125, %130 : vector<8x32xf32>
      %132 = vector.extract_strided_slice %118 {offsets = [0, 2, 0], sizes = [8, 1, 16], strides = [1, 1, 1]} : vector<8x8x16xbf16> to vector<8x1x16xbf16>
      %133 = vector.shape_cast %132 : vector<8x1x16xbf16> to vector<8x16xbf16>
      %c2_65 = arith.constant 2 : index
      %c0_66 = arith.constant 0 : index
      %c0_67 = arith.constant 0 : index
      %134 = vector.load %arg8[%c2_65, %c0_66, %c0_67] : memref<8x16x32xbf16, #tpu.memory_space<vmem>>, vector<1x16x32xbf16>
      %135 = vector.shape_cast %134 : vector<1x16x32xbf16> to vector<16x32xbf16>
      %cst_68 = arith.constant dense<0.000000e+00> : vector<8x32xf32>
      %136 = tpu.matmul %133, %135, %cst_68 {dimension_numbers = #tpu.dot_dimension_numbers<[1], [0], [0], [1], [0, 0, 1, 1], [], []>} : vector<8x16xbf16>, vector<16x32xbf16>, vector<8x32xf32> -> vector<8x32xf32>
      %137 = arith.addf %131, %136 : vector<8x32xf32>
      %138 = vector.extract_strided_slice %118 {offsets = [0, 3, 0], sizes = [8, 1, 16], strides = [1, 1, 1]} : vector<8x8x16xbf16> to vector<8x1x16xbf16>
      %139 = vector.shape_cast %138 : vector<8x1x16xbf16> to vector<8x16xbf16>
      %c3_69 = arith.constant 3 : index
      %c0_70 = arith.constant 0 : index
      %c0_71 = arith.constant 0 : index
      %140 = vector.load %arg8[%c3_69, %c0_70, %c0_71] : memref<8x16x32xbf16, #tpu.memory_space<vmem>>, vector<1x16x32xbf16>
      %141 = vector.shape_cast %140 : vector<1x16x32xbf16> to vector<16x32xbf16>
      %cst_72 = arith.constant dense<0.000000e+00> : vector<8x32xf32>
      %142 = tpu.matmul %139, %141, %cst_72 {dimension_numbers = #tpu.dot_dimension_numbers<[1], [0], [0], [1], [0, 0, 1, 1], [], []>} : vector<8x16xbf16>, vector<16x32xbf16>, vector<8x32xf32> -> vector<8x32xf32>
      %143 = arith.addf %137, %142 : vector<8x32xf32>
      %144 = vector.extract_strided_slice %118 {offsets = [0, 4, 0], sizes = [8, 1, 16], strides = [1, 1, 1]} : vector<8x8x16xbf16> to vector<8x1x16xbf16>
      %145 = vector.shape_cast %144 : vector<8x1x16xbf16> to vector<8x16xbf16>
      %c4_73 = arith.constant 4 : index
      %c0_74 = arith.constant 0 : index
      %c0_75 = arith.constant 0 : index
      %146 = vector.load %arg8[%c4_73, %c0_74, %c0_75] : memref<8x16x32xbf16, #tpu.memory_space<vmem>>, vector<1x16x32xbf16>
      %147 = vector.shape_cast %146 : vector<1x16x32xbf16> to vector<16x32xbf16>
      %cst_76 = arith.constant dense<0.000000e+00> : vector<8x32xf32>
      %148 = tpu.matmul %145, %147, %cst_76 {dimension_numbers = #tpu.dot_dimension_numbers<[1], [0], [0], [1], [0, 0, 1, 1], [], []>} : vector<8x16xbf16>, vector<16x32xbf16>, vector<8x32xf32> -> vector<8x32xf32>
      %149 = arith.addf %143, %148 : vector<8x32xf32>
      %150 = vector.extract_strided_slice %118 {offsets = [0, 5, 0], sizes = [8, 1, 16], strides = [1, 1, 1]} : vector<8x8x16xbf16> to vector<8x1x16xbf16>
      %151 = vector.shape_cast %150 : vector<8x1x16xbf16> to vector<8x16xbf16>
      %c5 = arith.constant 5 : index
      %c0_77 = arith.constant 0 : index
      %c0_78 = arith.constant 0 : index
      %152 = vector.load %arg8[%c5, %c0_77, %c0_78] : memref<8x16x32xbf16, #tpu.memory_space<vmem>>, vector<1x16x32xbf16>
      %153 = vector.shape_cast %152 : vector<1x16x32xbf16> to vector<16x32xbf16>
      %cst_79 = arith.constant dense<0.000000e+00> : vector<8x32xf32>
      %154 = tpu.matmul %151, %153, %cst_79 {dimension_numbers = #tpu.dot_dimension_numbers<[1], [0], [0], [1], [0, 0, 1, 1], [], []>} : vector<8x16xbf16>, vector<16x32xbf16>, vector<8x32xf32> -> vector<8x32xf32>
      %155 = arith.addf %149, %154 : vector<8x32xf32>
      %156 = vector.extract_strided_slice %118 {offsets = [0, 6, 0], sizes = [8, 1, 16], strides = [1, 1, 1]} : vector<8x8x16xbf16> to vector<8x1x16xbf16>
      %157 = vector.shape_cast %156 : vector<8x1x16xbf16> to vector<8x16xbf16>
      %c6 = arith.constant 6 : index
      %c0_80 = arith.constant 0 : index
      %c0_81 = arith.constant 0 : index
      %158 = vector.load %arg8[%c6, %c0_80, %c0_81] : memref<8x16x32xbf16, #tpu.memory_space<vmem>>, vector<1x16x32xbf16>
      %159 = vector.shape_cast %158 : vector<1x16x32xbf16> to vector<16x32xbf16>
      %cst_82 = arith.constant dense<0.000000e+00> : vector<8x32xf32>
      %160 = tpu.matmul %157, %159, %cst_82 {dimension_numbers = #tpu.dot_dimension_numbers<[1], [0], [0], [1], [0, 0, 1, 1], [], []>} : vector<8x16xbf16>, vector<16x32xbf16>, vector<8x32xf32> -> vector<8x32xf32>
      %161 = arith.addf %155, %160 : vector<8x32xf32>
      %162 = vector.extract_strided_slice %118 {offsets = [0, 7, 0], sizes = [8, 1, 16], strides = [1, 1, 1]} : vector<8x8x16xbf16> to vector<8x1x16xbf16>
      %163 = vector.shape_cast %162 : vector<8x1x16xbf16> to vector<8x16xbf16>
      %c7 = arith.constant 7 : index
      %c0_83 = arith.constant 0 : index
      %c0_84 = arith.constant 0 : index
      %164 = vector.load %arg8[%c7, %c0_83, %c0_84] : memref<8x16x32xbf16, #tpu.memory_space<vmem>>, vector<1x16x32xbf16>
      %165 = vector.shape_cast %164 : vector<1x16x32xbf16> to vector<16x32xbf16>
      %cst_85 = arith.constant dense<0.000000e+00> : vector<8x32xf32>
      %166 = tpu.matmul %163, %165, %cst_85 {dimension_numbers = #tpu.dot_dimension_numbers<[1], [0], [0], [1], [0, 0, 1, 1], [], []>} : vector<8x16xbf16>, vector<16x32xbf16>, vector<8x32xf32> -> vector<8x32xf32>
      %167 = arith.addf %161, %166 : vector<8x32xf32>
      %c0_86 = arith.constant 0 : index
      %c0_87 = arith.constant 0 : index
      %168 = vector.load %arg9[%c0_86, %c0_87] : memref<1x32xf32, #tpu.memory_space<vmem>>, vector<1x32xf32>
      %169 = vector.broadcast %168 : vector<1x32xf32> to vector<8x32xf32>
      %170 = arith.addf %167, %169 : vector<8x32xf32>
      %c0_88 = arith.constant 0 : index
      %c0_89 = arith.constant 0 : index
      %171 = vector.load %arg10[%c0_88, %c0_89] : memref<8x32xf32, #tpu.memory_space<vmem>>, vector<8x32xf32>
      tpu.vector_store %arg10[%c0_88, %c0_89], %170 {strides = array<i32>} : memref<8x32xf32, #tpu.memory_space<vmem>>, vector<8x32xf32>,
    } else {
    }
    return
  }
  func.func @transform_0(%arg0: i32, %arg1: i32, %arg2: memref<5xf32, #tpu.memory_space<smem>>, %arg3: memref<5xf32, #tpu.memory_space<smem>>) -> (i32, i32, i32, i32) {
    %c0_i32 = arith.constant 0 : i32
    %c0_i32_0 = arith.constant 0 : i32
    %c0_i32_1 = arith.constant 0 : i32
    return %arg0, %c0_i32, %arg1, %c0_i32_0 : i32, i32, i32, i32
  }
  func.func @transform_1(%arg0: i32, %arg1: i32, %arg2: memref<5xf32, #tpu.memory_space<smem>>, %arg3: memref<5xf32, #tpu.memory_space<smem>>) -> (i32, i32) {
    %c0_i32 = arith.constant 0 : i32
    %c0_i32_0 = arith.constant 0 : i32
    %c0_i32_1 = arith.constant 0 : i32
    return %c0_i32, %c0_i32_0 : i32, i32
  }
  func.func @transform_2(%arg0: i32, %arg1: i32, %arg2: memref<5xf32, #tpu.memory_space<smem>>, %arg3: memref<5xf32, #tpu.memory_space<smem>>) -> (i32, i32) {
    %c0_i32 = arith.constant 0 : i32
    %c0_i32_0 = arith.constant 0 : i32
    %c0_i32_1 = arith.constant 0 : i32
    return %c0_i32, %c0_i32_0 : i32, i32
  }
  func.func @transform_3(%arg0: i32, %arg1: i32, %arg2: memref<5xf32, #tpu.memory_space<smem>>, %arg3: memref<5xf32, #tpu.memory_space<smem>>) -> (i32, i32) {
    %c0_i32 = arith.constant 0 : i32
    %c0_i32_0 = arith.constant 0 : i32
    %c0_i32_1 = arith.constant 0 : i32
    return %c0_i32, %c0_i32_0 : i32, i32
  }
  func.func @transform_4(%arg0: i32, %arg1: i32, %arg2: memref<5xf32, #tpu.memory_space<smem>>, %arg3: memref<5xf32, #tpu.memory_space<smem>>) -> (i32, i32, i32) {
    %c0_i32 = arith.constant 0 : i32
    %c0_i32_0 = arith.constant 0 : i32
    %c0_i32_1 = arith.constant 0 : i32
    %c0_i32_2 = arith.constant 0 : i32
    return %c0_i32, %c0_i32_0, %c0_i32_1 : i32, i32, i32
  }
  func.func @transform_5(%arg0: i32, %arg1: i32, %arg2: memref<5xf32, #tpu.memory_space<smem>>, %arg3: memref<5xf32, #tpu.memory_space<smem>>) -> (i32, i32) {
    %c0_i32 = arith.constant 0 : i32
    %c0_i32_0 = arith.constant 0 : i32
    %c0_i32_1 = arith.constant 0 : i32
    return %c0_i32, %c0_i32_0 : i32, i32
  }
  func.func @transform_6(%arg0: i32, %arg1: i32, %arg2: memref<5xf32, #tpu.memory_space<smem>>, %arg3: memref<5xf32, #tpu.memory_space<smem>>) -> (i32, i32) {
    %c0_i32 = arith.constant 0 : i32
    %c0_i32_0 = arith.constant 0 : i32
    return %arg0, %c0_i32 : i32, i32
  }
}

</mosaic_0001>

<bundles_post_ra>
// kernel: tpu_custom_call.1
= control target key start
LH: loop header
LB: loop body
LE: loop exit
PB: predicated region body
PF: predicated region fallthrough
CT: control target
= control target key end

     0   :  { %s5082_s0 = inlined_call_operand.vmem [shape: f32[5], index: 0, kind: input, shape index: {}]   ;;  %s5083_s2 = inlined_call_operand.hbm [shape: bf16[16,5,32,32], index: 2, kind: input, shape index: {}]   ;;  %s5084_s3 = inlined_call_operand.vmem [shape: bf16[32,16], index: 3, kind: input, shape index: {}]   ;;  %s5085_s4 = inlined_call_operand.vmem [shape: bf16[32,8], index: 4, kind: input, shape index: {}]   ;;  %s5086_s5 = inlined_call_operand.vmem [shape: f32[1,8], index: 5, kind: input, shape index: {}]   ;;  %s5087_s6 = inlined_call_operand.hbm [shape: bf16[8,16,32], index: 6, kind: input, shape index: {}]   ;;  %s5088_s7 = inlined_call_operand.vmem [shape: f32[1,32], index: 7, kind: input, shape index: {}]   ;;  %s5089_s8 = inlined_call_operand.hbm [shape: f32[16,32], index: 8, kind: output, shape index: {}]   ;;  %s5090_s1 = inlined_call_operand.vmem [shape: f32[5], index: 1, kind: input, shape index: {}]  }
   0x1   :  { %5143 = sst [smem:[#allocation71_spill]] %s5083_s2  ;;  %s13_s29 = sshll.u32 %s5082_s0, 4  ;;  %s14_s29 = int_to_ptr.vmem [resolvable:$true] %s13_s29 }
   0x2   :  { %5144 = sst [smem:[#allocation72_spill]] %s5084_s3  ;;  %s17_s10 = sshll.u32 %s5090_s1, 4  ;;  %s18_s10 = int_to_ptr.vmem [resolvable:$true] %s17_s10 }
   0x3   :  { %5145 = sst [smem:[#allocation73_spill]] %s5087_s6  ;;  %s3539_s11 = scalar_lea.vmem %s14_s29, 16 }
   0x4   :  { %5146 = sst [smem:[#allocation74_spill]] %s5089_s8  ;;  %p3540_p0 = scmp.ne.s32.totalorder %s14_s29, %s3539_s11 }
   0x5   :  { %p3544_p1 = scmp.lt.s32.totalorder %s14_s29, %s14_s29  ;;  %p3545_p2 = scmp.lt.s32.totalorder %s3539_s11, %s3539_s11 }
   0x7   :  { %p3546_p3 = por %p3545_p2, %p3544_p1 }
   0x9   :  { %p3547_p4 = pnand %p3546_p3, %p3540_p0 }
   0xb   :  { %3550 = shalt.err (!%p3547_p4)  }
   0xc   :  { %s3717_s12 = smov [#allocation6]   ;;  %s3551_s13 = scalar_lea.vmem %s18_s10, 16 }
   0xd   :  { %16 = dma.vmem_to_smem %s14_s29, 16, %s3717_s12, [#allocation5] }
   0xe   :  { %p3552_p5 = scmp.ne.s32.totalorder %s18_s10, %s3551_s13  ;;  %p3556_p6 = scmp.lt.s32.totalorder %s18_s10, %s18_s10 }
   0xf   :  { %p3557_p7 = scmp.lt.s32.totalorder %s3551_s13, %s3551_s13 }
  0x11   :  { %p3558_p8 = por %p3557_p7, %p3556_p6 }
  0x13   :  { %p3559_p9 = pnand %p3558_p8, %p3552_p5 }
  0x15   :  { %3562 = shalt.err (!%p3559_p9)  }
  0x16   :  { %s3718_s0 = smov [#allocation7]  }
  0x17   :  { %20 = dma.vmem_to_smem %s18_s10, 16, %s3718_s0, [#allocation5] }
  0x18   :  { %3659 = dma.done.wait [#allocation5], 32 }
  0x19   :  { %3660 = vsyncadd [#allocation5], 4294967264 }
  0x1a   :  { %22 = sfence }
  0x1b   :  { %23 = vsyncpa [#allocation9], 0 }
  0x1c   :  { %25 = vsyncpa [#allocation9 + $0x1], 0 }
  0x1d   :  { %26 = vsyncpa [#allocation12], 0 }
  0x1e   :  { %27 = vsyncpa [#allocation10], 0 }
  0x1f   :  { %29 = vsyncpa [#allocation10 + $0x1], 0  ;;  %s3786_s1 = smov 0   ;;  %s3788_s14 = smov 0  }
  0x20   :  { %s3790_s15 = smov 0   ;;  %s3792_s16 = smov 0  }
  0x21   :  { %s3794_s17 = smov 0   ;;  %s3796_s18 = smov 0  }
  0x22   :  { %s3798_s19 = smov 0   ;;  %s3800_s20 = smov 0  }
  0x23   :  { %s3802_s21 = smov 0   ;;  %s3804_s22 = smov 0  }
  0x24   :  { %s3806_s23 = smov 0  }
  0x25 LB: > { %5147 = sst [smem:[#allocation21_spill]] %s3683_s15  ;;  %s3047_s24 = sadd.s32 4294967295, %s3715_s23   ;;  %s3715_s23 = sphi %s3806_s23, %s35_s23   ;;  %s3711_s22 = sphi %s3804_s22, %s5264_s22   ;;  %s3707_s21 = sphi %s3802_s21, %s5263_s21   ;;  %s3703_s20 = sphi %s3800_s20, %s5262_s20   ;;  %s3699_s19 = sphi %s3798_s19, %s5261_s19   ;;  %s3695_s18 = sphi %s3796_s18, %s5260_s18   ;;  %s3691_s17 = sphi %s3794_s17, %s5268_s17   ;;  %s3687_s16 = sphi %s3792_s16, %s5267_s16   ;;  %s3683_s15 = sphi %s3790_s15, %s5258_s15   ;;  %s3679_s14 = sphi %s3788_s14, %s5266_s14   ;;  %s3675_s1 = sphi %s3786_s1, %s5265_s1  }
  0x26   : > { %5148 = sst [smem:[#allocation22_spill]] %s3695_s18  ;;  %s3048_s25 = sadd.s32 4294967294, %s3715_s23  }
  0x27   : > { %5149 = sst [smem:[#allocation23_spill]] %s3707_s21  ;;  %s44_s26 = sadd.s32 1, %s3707_s21 }
  0x28   : > { %5150 = sst [smem:[#allocation24_spill]] %s3711_s22  ;;  %s47_s27 = sadd.s32 1, %s3711_s22 }
  0x29   : > { %p45_p10 = scmp.ge.s32.totalorder %s44_s26, 2  ;;  %s56_s28 = sadd.s32 1, %s3695_s18 }
  0x2a   : > { %p63_p11 = scmp.ne.s32.totalorder %s3695_s18, %s3691_s17  ;;  %p64_p12 = scmp.eq.s32.totalorder %s3715_s23, 0 }
  0x2b   : > { %s5270_s26 = smov (%p45_p10, %s44_s26), 0  ;;  %s5272_s27 = smov (!%p45_p10, %s47_s27), %s3711_s22 }
  0x2c   : > { %5151 = sst [smem:[#allocation25_spill]] %s5270_s26  ;;  %s52_s29 = ssub.s32 %s3707_s21, %s5270_s26 }
  0x2d   : > { %p3852_p13 = por %p64_p12, %p63_p11  ;;  %p49_p0 = scmp.ge.s32.totalorder %s5272_s27, 2 }
  0x2e   : > { %p69_p1 = scmp.ne.s32.totalorder %s3691_s17, %s3687_s16  ;;  %p3857_p2 = scmp.eq.s32.totalorder %s3047_s24, 0 }
  0x2f   : > { %s187_s10 = sadd.s32 1, %s3683_s15  ;;  %s5274_s27 = smov (%p49_p0, %s5272_s27), 0 }
  0x30   : > { %5154 = sst [smem:[#allocation26_spill]] %s5274_s27  ;;  %p3866_p3 = por %p3857_p2, %p69_p1 }
  0x31   : > { %p197_p4 = scmp.ne.s32.totalorder %s3683_s15, %s3679_s14  ;;  %s51_s12 = ssub.s32 %s3711_s22, %s5274_s27 }
  0x32   : > { %s5155_s11 = scalar_select %p3866_p3, 1, 0 }
  0x33   : > { %p198_p5 = scmp.eq.s32.totalorder %s3047_s24, 3  ;;  %s53_s13 = sor.u32 %s52_s29, %s51_s12 }
  0x34   : > { %p185_p6 = scmp.eq.s32.totalorder %s51_s12, 0  ;;  %p54_p7 = scmp.eq.s32.totalorder %s53_s13, 0 }
  0x35   : > { %p3874_p8 = por %p198_p5, %p197_p4  ;;  %p203_p9 = scmp.ne.s32.totalorder %s3679_s14, %s3675_s1 }
  0x36   : > { %s3879_s16 = scalar_select %p185_p6, %s3683_s15, %s187_s10  }
  0x37   : > { %s5156_s0 = scalar_select %p3874_p8, 1, 0 }
  0x38   : > { %5157 = sst [smem:[#allocation27_spill]] %s3879_s16  ;;  %p204_p10 = scmp.eq.s32.totalorder %s3048_s25, 3 }
  0x39   : > { %s3882_s26 = scalar_select %p54_p7, %s3695_s18, %s56_s28  }
  0x3a   : > { %p3049_p11 = scmp.ge.s32.totalorder %s3715_s23, 1  ;;  %p211_p12 = scmp.lt.s32.totalorder %s3715_s23, 5 }
  0x3b   : > { %5158 = sst [smem:[#allocation28_spill]] %s3882_s26  ;;  %p3888_p0 = por %p204_p10, %p203_p9 }
  0x3c   : > { %p3892_p1 = pnand %p3049_p11, %p211_p12  ;;  %s3719_s29 = smov [#allocation11]  }
  0x3d   : > { %s5159_s8 = scalar_select %p3888_p0, 1, 0 }
  0x3e   : > { %s232_s12 = sshll.u32 %s3719_s29, 4  ;;  %p3391_p4 = pneg %p3892_p1  ;;  %s233_s12 = int_to_ptr.vmem [resolvable:$true] %s232_s12 }
  0x3f   : > { %5160 = sst [smem:[#allocation29_spill]] %s5159_s8  ;;  %s3574_s25 = scalar_lea.vmem %s233_s12, 1024 }
  0x40   : > { %p3392_p5 = pnand %p3391_p4, %p3857_p2  ;;  %p3575_p7 = scmp.ne.s32.totalorder %s233_s12, %s3574_s25 }
  0x41   : > { %p3582_p10 = scmp.lt.s32.totalorder %s233_s12, %s233_s12  ;;  %p3583_p3 = scmp.lt.s32.totalorder %s3574_s25, %s3574_s25 }
  0x42   : > { %p3565_p6 = pneg %p3392_p5 }
  0x43   : > { %p3584_p0 = por %p3583_p3, %p3582_p10 }
  0x44   : > { %p3577_p8 = pnand %p3575_p7, %p3565_p6 }
  0x46   : > { %p3578_p9 = pneg %p3577_p8 }
  0x48   : > { %p3585_p11 = pnand %p3584_p0, %p3578_p9 }
  0x4a   : > { %3588 = shalt.err (!%p3585_p11)
}
  0x4b   : > { %s3720_s28 = smov 64   ;;  %s3721_s10 = smov 4  }
  0x4c   : > { %s5162_s6 = sld [smem:[#allocation73_spill]]  ;;  %p3051_p12 = scmp.ge.s32.totalorder %s3715_s23, 4 }
  0x4e   : > { %245 = sbr.rel (%p3051_p12) target bundleno = 103 (0x67), region = 36 }
  0x52   : > { %3394 = dma.hbm_to_vmem [thread:$0]  (!%p3392_p5), %s5162_s6, 1024, %s233_s12, [#allocation12], %s3720_s28, %s3720_s28, %s3721_s10  }
  0x53   : > { %s249_s29 = sand.u32 1, %s3695_s18   ;;  %s3053_s26 = sshll.u32 %s3707_s21, 1 }
  0x54   : > { %s3373_s25 = smul.u32 320, %s249_s29  ;;  %s3722_s15 = smov 256  }
  0x55   : > { %s3374_s16 = smul.u32 160, %s3711_s22  ;;  %3379 = sst [smem:[#allocation15]] (%p3852_p13), %s3722_s15 }
  0x56   : > { %s253_s12 = scalar_lea.vmem [#allocation8], %s3373_s25  ;;  %s3723_s13 = smov 128  }
  0x57   : > { %s260_s27 = sadd.s32 %s3374_s16, %s3053_s26  ;;  %s275_s28 = sshll.u32 %s253_s12, 4  ;;  %s276_s28 = int_to_ptr.vmem [resolvable:$true] %s275_s28 }
  0x58   : > { %s3378_s10 = scalar_select %p3852_p13, [#allocation0], [#allocation16] }
  0x59   : > { %3380 = sst [smem:[#allocation15 + $0x1]] (%p3852_p13), %s3723_s13  ;;  %s3724_s18 = smov 2  }
  0x5a   : > { %s267_s6 = sld [smem:[%s3378_s10]]   ;;  %s3055_s21 = sshll.u32 %s260_s27, 6 }
  0x5b   : > { %3381 = sst [smem:[#allocation15 + $0x2]] (%p3852_p13), %s3724_s18  ;;  %s3725_s8 = smov 64  }
  0x5c   : > { %3382 = sst [smem:[#allocation15 + $0x3]] (%p3852_p13), %s3725_s8  ;;  %s3726_s15 = smov 4  }
  0x5d   : > { %3383 = sst [smem:[#allocation15 + $0x4]] (%p3852_p13), %s3725_s8  ;;  %s250_s10 = scalar_lea.sflag [#allocation9], %s249_s29 }
  0x5e   : > { %3384 = sst [smem:[#allocation15 + $0x5]] (%p3852_p13), %s3726_s15  ;;  %s3727_s22 = smov 131072  }
  0x5f   : > { %s5163_s2 = sld [smem:[#allocation71_spill]] }
  0x60   : > { %s3056_s12 = sshll.u32 %s267_s6, 26 }
  0x61   : > { %s3057_s13 = sadd.s32 134217728, %s3056_s12 }
  0x65   : > { %s262_s25 = scalar_lea.hbm %s5163_s2, %s3055_s21 }
  0x66   : > { %3385 = dma.general (%p3852_p13), %s262_s25, 5120, %s276_s28, %s250_s10, %s3727_s22, [#allocation15], %s3057_s13, 0  }
  0x67 PF: > { %300 = sbr.rel (%p3892_p1) target bundleno = 1443 (0x5a3), region = 44 }
  0x6c   : > { %s302_s8 = sand.u32 1, %s3691_s17   ;;  %p5164_p3 = scmp.ne.s32.totalorder %s5155_s11, 0 }
  0x6d   : > { %s3375_s18 = smul.u32 320, %s302_s8  ;;  %s303_s27 = scalar_lea.sflag [#allocation9], %s302_s8 }
  0x6f   : > { %s3929_s15 = scalar_lea.vmem [#allocation8], %s3375_s18 }
  0x70   : > { %3662 = dma.done.wait (%p5164_p3), %s303_s27, 5120  }
  0x71   : > { %3664 = vsyncadd (%p5164_p3), %s303_s27, 4294962176 }
  0x72   : > { %3666 = dma.done.wait (%p3857_p2), [#allocation12], 1024  }
  0x73   : > { %3668 = vsyncadd (%p3857_p2), [#allocation12], 4294966272  ;;  %s5142_s6 = sand.u32 1, %s3679_s14   ;;  %p3061_p13 = scmp.ne.s32.totalorder %s3699_s19, 0 }
  0x74   : > { %s3942_s21 = sshll.u32 %s5142_s6, 3 }
  0x75   : > { %345 = sbr.rel (%p3061_p13) target bundleno = 128 (0x80), region = 56 }
  0x7a   : > { %vm346_vm0 = vcmask 64512   ;;  %vm349_vm1 = vcmask 130048   ;;  %v3728_v0 = vmov -inf   ;;  %v3729_v1 = vmov 0.0  }
  0x7b   : > { %347 = vst.msk [vmem:[#allocation2] sm:$0xff] %vm346_vm0, %v3728_v0  ;;  %348 = vst.msk [vmem:[#allocation3] sm:$0xff] %vm346_vm0, %v3729_v1 }
  0x7c   : > { %350 = vst.msk [vmem:[#allocation4] sm:$0xff] %vm349_vm1, %v3729_v1  ;;  %351 = vst.msk [vmem:[#allocation4 + $0x8] sm:$0xff] %vm349_vm1, %v3729_v1 }
  0x7d   : > { %352 = vst.msk [vmem:[#allocation4 + $0x10] sm:$0xff] %vm349_vm1, %v3729_v1  ;;  %353 = vst.msk [vmem:[#allocation4 + $0x18] sm:$0xff] %vm349_vm1, %v3729_v1 }
  0x7e   : > { %354 = vst.msk [vmem:[#allocation4 + $0x20] sm:$0xff] %vm349_vm1, %v3729_v1  ;;  %355 = vst.msk [vmem:[#allocation4 + $0x28] sm:$0xff] %vm349_vm1, %v3729_v1 }
  0x7f   : > { %356 = vst.msk [vmem:[#allocation4 + $0x30] sm:$0xff] %vm349_vm1, %v3729_v1  ;;  %357 = vst.msk [vmem:[#allocation4 + $0x38] sm:$0xff] %vm349_vm1, %v3729_v1 }
  0x80 PF: > { %v3507_v2 = vld [vmem:[%s5085_s4 + $0x8] sm:$0xff]   ;;  %v3508_v3 = vld [vmem:[%s5085_s4] sm:$0xff]   ;;  %s374_s29 = sld [smem:[#allocation6]]  ;;  %v3962_v4 = vld [vmem:[%s3929_s15] sm:$0xf]  ;;  %vm1079_vm2 = vcmask 261120  }
  0x81   : > { %3237 = vmatprep.subr.bf16.mxu0 %v3507_v2  ;;  %s3952_s28 = sld [smem:[#allocation6 + $0x1]]  ;;  %v3965_v5 = vld [vmem:[%s3929_s15 + $0x4] sm:$0xf]  ;;  %v3971_v6 = vld [vmem:[%s3929_s15 + $0x28] sm:$0xf]  ;;  %vm1603_vm3 = vcmask 130048  }
  0x82   : > { %3238 = vmatpush3.bf16.msra.mxu0 %v3507_v2  ;;  %s3954_s26 = sld [smem:[#allocation6 + $0x2]]  ;;  %v3974_v7 = vld [vmem:[%s3929_s15 + $0x2c] sm:$0xf]  ;;  %v3978_v8 = vld [vmem:[%s3929_s15 + $0x50] sm:$0xf]  ;;  %vm1670_vm4 = vcmask 1041409  }
  0x83   : > { %3239 = vmatprep.subr.bf16.mxu0 %v3508_v3  ;;  %s3956_s16 = sld [smem:[#allocation6 + $0x3]]  ;;  %v3981_v9 = vld [vmem:[%s3929_s15 + $0x54] sm:$0xf]  ;;  %v3984_v10 = vld [vmem:[%s3929_s15 + $0x78] sm:$0xf]  ;;  %vm1672_vm5 = vcmask 1042434  }
  0x84   : > { %s3958_s12 = sld [smem:[#allocation6 + $0x4]]  ;;  %v3987_v11 = vld [vmem:[%s3929_s15 + $0x7c] sm:$0xf]  ;;  %v3999_v15 = vld [vmem:[%s3929_s15 + $0x8] sm:$0xf]  ;;  %vm1674_vm6 = vcmask 1043459  }
  0x85   : > { %v4002_v16 = vld [vmem:[%s3929_s15 + $0xc] sm:$0xf]  ;;  %v4011_v19 = vld [vmem:[%s3929_s15 + $0x30] sm:$0xf]  ;;  %v4014_v20 = vld [vmem:[%s3929_s15 + $0x34] sm:$0xf] }
  0x86   : > { %3240 = vmatpush3.bf16.msra.mxu0 %v3508_v3  ;;  %s377_s25 = sshrl.u32 %s374_s29, 16  ;;  %p376_p2 = scmp.ne.f32.partialorder %s374_s29, %s374_s29  ;;  %v4022_v23 = vld [vmem:[%s3929_s15 + $0x58] sm:$0xf]  ;;  %v4025_v24 = vld [vmem:[%s3929_s15 + $0x5c] sm:$0xf]  ;;  %vm1676_vm7 = vcmask 1044484  }
  0x87   : > { %s378_s13 = sand.u32 1, %s377_s25  ;;  %s488_s8 = sshrl.u32 %s3952_s28, 16  ;;  %v4032_v30 = vld [vmem:[%s3929_s15 + $0xa0] sm:$0xf]  ;;  %v4035_v31 = vld [vmem:[%s3929_s15 + $0xa4] sm:$0xf] }
  0x88   : > { %s379_s10 = sadd.s32 32767, %s378_s13  ;;  %s489_s27 = sand.u32 1, %s488_s8  ;;  %v4041_v36 = vld [vmem:[%s3929_s15 + $0x80] sm:$0xf]  ;;  %v4044_v37 = vld [vmem:[%s3929_s15 + $0x84] sm:$0xf] }
  0x89   : > { %s380_s18 = sadd.s32 %s379_s10, %s374_s29  ;;  %s490_s9 = sadd.s32 32767, %s489_s27  ;;  %v4068_v46 = vld [vmem:[%s3929_s15 + $0x10] sm:$0xf]  ;;  %v4079_v53 = vld [vmem:[%s3929_s15 + $0x14] sm:$0xf]  ;;  %vm1678_vm8 = vcmask 1045509  }
  0x8a   : > { %s381_s30 = sand.u32 4294901760, %s380_s18  ;;  %p487_p8 = scmp.ne.f32.partialorder %s3952_s28, %s3952_s28  ;;  %v4083_v56 = vld [vmem:[%s3929_s15 + $0x38] sm:$0xf]  ;;  %v4086_v57 = vld [vmem:[%s3929_s15 + $0x3c] sm:$0xf]  ;;  %vm1680_vm9 = vcmask 1046534  }
  0x8b   : > { %s5276_s30 = smov (%p376_p2, %s381_s30), 2143289344  ;;  %s491_s11 = sadd.s32 %s3952_s28, %s490_s9  ;;  %v4089_v60 = vld [vmem:[%s3929_s15 + $0x60] sm:$0xf]  ;;  %v4097_v3 = vld [vmem:[%s3929_s15 + $0x64] sm:$0xf]  ;;  %vm1682_vm10 = vcmask 1047559  }
  0x8c   : > { %s384_s24 = sshrl.u32 %s5276_s30, 16  ;;  %s492_s25 = sand.u32 4294901760, %s491_s11  ;;  %v4175_v40 = vld [vmem:[%s3929_s15 + $0x70] sm:$0xf]  ;;  %vm1844_vm11 = vcmask 64512   ;;  %vm3731_vm12 = vmmov 0  }
  0x8d   : > { %s385_s29 = sshll.u32 %s384_s24, 16  ;;  %s631_s13 = sshrl.u32 %s3954_s26, 16  ;;  %5172 = vst [vmem:[#allocation37_spill] sm:$0xff] %v4175_v40 }
  0x8e   : > { %s386_s10 = sor.u32 %s385_s29, %s384_s24  ;;  %s632_s8 = sand.u32 1, %s631_s13 }
  0x8f   : > { %v3989_v12 = vstv %s386_s10  ;;  %s5278_s25 = smov (%p487_p8, %s492_s25), 2143289344  ;;  %p630_p0 = scmp.ne.f32.partialorder %s3954_s26, %s3954_s26 }
  0x90   : > { %v389_v13 = vmul.bf16 %v3989_v12, %v3962_v4  ;;  %v390_v14 = vmul.bf16 %v3989_v12, %v3965_v5  ;;  %s633_s18 = sadd.s32 32767, %s632_s8  ;;  %v391_v17 = vmul.bf16 %v3989_v12, %v3971_v6  ;;  %v392_v18 = vmul.bf16 %v3989_v12, %v3974_v7  ;;  %s495_s28 = sshrl.u32 %s5278_s25, 16 }
  0x91   : > { %s634_s27 = sadd.s32 %s3954_s26, %s633_s18  ;;  %v393_v21 = vmul.bf16 %v3989_v12, %v3978_v8  ;;  %v394_v22 = vmul.bf16 %v3989_v12, %v3981_v9  ;;  %v395_v25 = vmul.bf16 %v3989_v12, %v3984_v10  ;;  %v396_v26 = vmul.bf16 %v3989_v12, %v3987_v11  ;;  %s496_s30 = sshll.u32 %s495_s28, 16 }
  0x92   : > { %v405_v27 = vunpack.c.l.bf16 %v389_v13  ;;  %v406_v28 = vunpack.c.l.bf16 %v390_v14  ;;  %s635_s9 = sand.u32 4294901760, %s634_s27  ;;  %v407_v29 = vunpack.c.l.bf16 %v391_v17  ;;  %s497_s11 = sor.u32 %s496_s30, %s495_s28  ;;  %v408_v32 = vunpack.c.l.bf16 %v392_v18 }
  0x93   : > { %s774_s24 = sshrl.u32 %s3956_s16, 16  ;;  %v409_v33 = vunpack.c.l.bf16 %v393_v21  ;;  %v410_v34 = vunpack.c.l.bf16 %v394_v22  ;;  %v4038_v35 = vunpack.c.l.bf16 %v395_v25  ;;  %v4046_v38 = vstv %s497_s11  ;;  %s5280_s9 = smov (%p630_p0, %s635_s9), 2143289344  ;;  %v4109_v21 = vld [vmem:[%s3929_s15 + $0x18] sm:$0xf] }
  0x94   : > { %v4051_v39 = vunpack.c.l.bf16 %v396_v26  ;;  %v500_v42 = vmul.bf16 %v3999_v15, %v4046_v38  ;;  %v501_v43 = vmul.bf16 %v4002_v16, %v4046_v38  ;;  %p773_p1 = scmp.ne.f32.partialorder %s3956_s16, %s3956_s16  ;;  %s775_s26 = sand.u32 1, %s774_s24  ;;  %v502_v44 = vmul.bf16 %v4011_v19, %v4046_v38 }
  0x95   : > { %v503_v45 = vmul.bf16 %v4014_v20, %v4046_v38  ;;  %s638_s25 = sshrl.u32 %s5280_s9, 16  ;;  %s776_s29 = sadd.s32 32767, %s775_s26  ;;  %v504_v47 = vmul.bf16 %v4022_v23, %v4046_v38  ;;  %v505_v48 = vmul.bf16 %v4025_v24, %v4046_v38  ;;  %v506_v49 = vmul.bf16 %v4041_v36, %v4046_v38 }
  0x96   : > { %v507_v50 = vmul.bf16 %v4044_v37, %v4046_v38  ;;  %v516_v51 = vunpack.c.l.bf16 %v500_v42  ;;  %v517_v52 = vunpack.c.l.bf16 %v501_v43  ;;  %s639_s13 = sshll.u32 %s638_s25, 16  ;;  %s777_s10 = sadd.s32 %s3956_s16, %s776_s29  ;;  %v518_v54 = vunpack.c.l.bf16 %v502_v44  ;;  %v4119_v43 = vld [vmem:[%s3929_s15 + $0x40] sm:$0xf] }
  0x97   : > { %v519_v55 = vunpack.c.l.bf16 %v503_v45  ;;  %s640_s8 = sor.u32 %s639_s13, %s638_s25  ;;  %s778_s18 = sand.u32 4294901760, %s777_s10  ;;  %v520_v58 = vunpack.c.l.bf16 %v504_v47  ;;  %v521_v59 = vunpack.c.l.bf16 %v505_v48  ;;  %v522_v61 = vunpack.c.l.bf16 %v506_v49  ;;  %v4128_v47 = vld [vmem:[%s3929_s15 + $0x68] sm:$0xf] }
  0x98   : > { %v523_v62 = vunpack.c.l.bf16 %v507_v50  ;;  %v532_v63 = vadd.f32 %v516_v51, %v405_v27  ;;  %v533_v0 = vadd.f32 %v517_v52, %v406_v28  ;;  %v4091_v1 = vstv %s640_s8  ;;  %s5282_s18 = smov (%p773_p1, %s778_s18), 2143289344  ;;  %p916_p4 = scmp.ne.f32.partialorder %s3958_s12, %s3958_s12  ;;  %5166 = vst [vmem:[#allocation31_spill] sm:$0xff] %v4128_v47 }
  0x99   : > { %v534_v2 = vadd.f32 %v518_v54, %v407_v29  ;;  %v643_v13 = vmul.bf16 %v4068_v46, %v4091_v1  ;;  %v644_v14 = vmul.bf16 %v4079_v53, %v4091_v1  ;;  %s917_s28 = sshrl.u32 %s3958_s12, 16  ;;  %v535_v17 = vadd.f32 %v519_v55, %v408_v32  ;;  %s781_s16 = sshrl.u32 %s5282_s18, 16  ;;  %v4116_v32 = vld [vmem:[%s3929_s15 + $0x1c] sm:$0xf]  ;;  %v4137_v55 = vld [vmem:[%s3929_s15 + $0x6c] sm:$0xf] }
  0x9a   : > { %v645_v18 = vmul.bf16 %v4083_v56, %v4091_v1  ;;  %s918_s27 = sand.u32 1, %s917_s28  ;;  %v646_v22 = vmul.bf16 %v4086_v57, %v4091_v1  ;;  %v536_v25 = vadd.f32 %v520_v58, %v409_v33  ;;  %v537_v26 = vadd.f32 %v521_v59, %v410_v34  ;;  %s782_s30 = sshll.u32 %s781_s16, 16  ;;  %v4125_v34 = vld [vmem:[%s3929_s15 + $0x44] sm:$0xf]  ;;  %5167 = vst [vmem:[#allocation32_spill] sm:$0xff] %v4137_v55 }
  0x9b   : > { %v647_v27 = vmul.bf16 %v4089_v60, %v4091_v1  ;;  %v659_v28 = vunpack.c.l.bf16 %v643_v13  ;;  %v660_v29 = vunpack.c.l.bf16 %v644_v14  ;;  %s919_s9 = sadd.s32 32767, %s918_s27  ;;  %v648_v44 = vmul.bf16 %v4097_v3, %v4091_v1  ;;  %s783_s11 = sor.u32 %s782_s30, %s781_s16  ;;  %5165 = vst [vmem:[#allocation30_spill] sm:$0xff] %v4125_v34 }
  0x9c   : > { %v661_v42 = vunpack.c.l.bf16 %v645_v18  ;;  %s920_s24 = sadd.s32 %s3958_s12, %s919_s9  ;;  %v662_v33 = vunpack.c.l.bf16 %v646_v22  ;;  %v538_v48 = vadd.f32 %v522_v61, %v4038_v35  ;;  %v4132_v49 = vadd.f32 %v523_v62, %v4051_v39  ;;  %v4149_v61 = vld [vmem:[%s3929_s15 + $0x88] sm:$0xf]  ;;  %v4152_v62 = vld [vmem:[%s3929_s15 + $0x20] sm:$0xf]  ;;  %s5208_s3 = sld [smem:[#allocation72_spill]] }
  0x9d   : > { %v663_v45 = vunpack.c.l.bf16 %v647_v27  ;;  %v675_v50 = vadd.f32 %v659_v28, %v532_v63  ;;  %v676_v51 = vadd.f32 %v660_v29, %v533_v0  ;;  %v4134_v52 = vstv %s783_s11  ;;  %s921_s26 = sand.u32 4294901760, %s920_s24  ;;  %5168 = vst [vmem:[#allocation33_spill] sm:$0xff] %v4152_v62  ;;  %v4164_v28 = vld [vmem:[%s3929_s15 + $0x8c] sm:$0xf]  ;;  %s421_s16 = sld [smem:[#allocation7]] }
  0x9e   : > { %v677_v54 = vadd.f32 %v661_v42, %v534_v2  ;;  %v786_v58 = vmul.bf16 %v4109_v21, %v4134_v52  ;;  %v787_v59 = vmul.bf16 %v4116_v32, %v4134_v52  ;;  %s5284_s26 = smov (%p916_p4, %s921_s26), 2143289344  ;;  %v678_v35 = vadd.f32 %v662_v33, %v535_v17  ;;  %v4159_v17 = vld [vmem:[%s3929_s15 + $0x24] sm:$0xf]  ;;  %v4170_v42 = vld [vmem:[%s3929_s15 + $0x4c] sm:$0xf]  ;;  %s4430_s27 = sld [smem:[#allocation7 + $0x1]] }
  0x9f   : > { %v788_v39 = vmul.bf16 %v4119_v43, %v4134_v52  ;;  %v789_v63 = vmul.bf16 %v4125_v34, %v4134_v52  ;;  %v664_v0 = vunpack.c.l.bf16 %v648_v44  ;;  %v679_v2 = vadd.f32 %v663_v45, %v536_v25  ;;  %5169 = vst [vmem:[#allocation34_spill] sm:$0xff] %v4159_v17  ;;  %s924_s12 = sshrl.u32 %s5284_s26, 16  ;;  %v4167_v25 = vld [vmem:[%s3929_s15 + $0x48] sm:$0xf]  ;;  %5171 = vst [vmem:[#allocation36_spill] sm:$0xff] %v4170_v42  ;;  %s4432_s30 = sld [smem:[#allocation7 + $0x2]] }
  0xa0   : > { %v790_v13 = vmul.bf16 %v4128_v47, %v4134_v52  ;;  %v802_v14 = vunpack.c.l.bf16 %v786_v58  ;;  %v803_v18 = vunpack.c.l.bf16 %v787_v59  ;;  %v791_v27 = vmul.bf16 %v4137_v55, %v4134_v52  ;;  %s925_s25 = sshll.u32 %s924_s12, 16  ;;  %5170 = vst [vmem:[#allocation35_spill] sm:$0xff] %v4167_v25  ;;  %v4178_v55 = vld [vmem:[%s3929_s15 + $0x74] sm:$0xf]  ;;  %s4434_s9 = sld [smem:[#allocation7 + $0x3]] }
  0xa1   : > { %v804_v22 = vunpack.c.l.bf16 %v788_v39  ;;  %v805_v29 = vunpack.c.l.bf16 %v789_v63  ;;  %v680_v44 = vadd.f32 %v664_v0, %v537_v26  ;;  %v649_v45 = vmul.bf16 %v4149_v61, %v4091_v1  ;;  %s926_s29 = sor.u32 %s925_s25, %s924_s12  ;;  %5173 = vst [vmem:[#allocation38_spill] sm:$0xff] %v4178_v55  ;;  %s4436_s24 = sld [smem:[#allocation7 + $0x4]] }
  0xa2   : > { %v806_v33 = vunpack.c.l.bf16 %v790_v13  ;;  %v818_v58 = vadd.f32 %v802_v14, %v675_v50  ;;  %v819_v59 = vadd.f32 %v803_v18, %v676_v51  ;;  %v807_v41 = vunpack.c.l.bf16 %v791_v27  ;;  %p3163_p11 = scmp.ne.s32.totalorder %s3699_s19, 1 }
  0xa3   : > { %v820_v39 = vadd.f32 %v804_v22, %v677_v54  ;;  %v4180_v47 = vstv %s926_s29  ;;  %v821_v63 = vadd.f32 %v805_v29, %v678_v35  ;;  %v650_v26 = vmul.bf16 %v4164_v28, %v4091_v1  ;;  %s424_s11 = sshrl.u32 %s421_s16, 16  ;;  %p423_p5 = scmp.ne.f32.partialorder %s421_s16, %s421_s16 }
  0xa4   : > { %v822_v34 = vadd.f32 %v806_v33, %v679_v2  ;;  %v929_v0 = vmul.bf16 %v4152_v62, %v4180_v47  ;;  %v930_v50 = vmul.bf16 %v4159_v17, %v4180_v47  ;;  %v931_v51 = vmul.bf16 %v4167_v25, %v4180_v47  ;;  %v4197_v33 = vld [vmem:[%s3929_s15 + $0x90] sm:$0xf]  ;;  %s425_s26 = sand.u32 1, %s424_s11  ;;  %s551_s25 = sshrl.u32 %s4430_s27, 16 }
  0xa5   : > { %v932_v54 = vmul.bf16 %v4170_v42, %v4180_v47  ;;  %v823_v13 = vadd.f32 %v807_v41, %v680_v44  ;;  %v933_v35 = vmul.bf16 %v4175_v40, %v4180_v47  ;;  %v934_v2 = vmul.bf16 %v4178_v55, %v4180_v47  ;;  %v4200_v41 = vld [vmem:[%s3929_s15 + $0x94] sm:$0xf]  ;;  %v4203_v44 = vld [vmem:[%s3929_s15 + $0x98] sm:$0xf]  ;;  %s426_s12 = sadd.s32 32767, %s425_s26  ;;  %p550_p6 = scmp.ne.f32.partialorder %s4430_s27, %s4430_s27 }
  0xa6   : > { %v665_v14 = vunpack.c.l.bf16 %v649_v45  ;;  %v945_v18 = vunpack.c.l.bf16 %v929_v0  ;;  %v946_v22 = vunpack.c.l.bf16 %v930_v50  ;;  %v947_v27 = vunpack.c.l.bf16 %v931_v51  ;;  %v4206_v50 = vld [vmem:[%s3929_s15 + $0x9c] sm:$0xf]  ;;  %s427_s29 = sadd.s32 %s426_s12, %s421_s16  ;;  %s694_s22 = sshrl.u32 %s4432_s30, 16 }
  0xa7   : > { %v948_v29 = vunpack.c.l.bf16 %v932_v54  ;;  %v949_v25 = vunpack.c.l.bf16 %v933_v35  ;;  %v950_v17 = vunpack.c.l.bf16 %v934_v2  ;;  %v666_v62 = vunpack.c.l.bf16 %v650_v26  ;;  %5174 = vst [vmem:[#allocation39_spill] sm:$0xff] %v4206_v50  ;;  %v4212_v26 = vld [vmem:[%s3929_s15 + $0xa8] sm:$0xf]  ;;  %s428_s13 = sand.u32 4294901760, %s427_s29  ;;  %p693_p7 = scmp.ne.f32.partialorder %s4432_s30, %s4432_s30 }
  0xa8   : > { %v681_v42 = vadd.f32 %v665_v14, %v538_v48  ;;  %v961_v55 = vadd.f32 %v945_v18, %v818_v58  ;;  %v962_v45 = vadd.f32 %v946_v22, %v819_v59  ;;  %v963_v40 = vadd.f32 %v947_v27, %v820_v39  ;;  %5175 = vst [vmem:[#allocation40_spill] sm:$0xff] %v4212_v26  ;;  %v4219_v39 = vld [vmem:[%s3929_s15 + $0xac] sm:$0xf]  ;;  %s5286_s13 = smov (%p423_p5, %s428_s13), 2143289344  ;;  %s837_s11 = sshrl.u32 %s4434_s9, 16 }
  0xa9   : > { %v964_v0 = vadd.f32 %v948_v29, %v821_v63  ;;  %v965_v51 = vadd.f32 %v949_v25, %v822_v34  ;;  %v966_v54 = vadd.f32 %v950_v17, %v823_v13  ;;  %v682_v35 = vadd.f32 %v666_v62, %v4132_v49  ;;  %5176 = vst [vmem:[#allocation41_spill] sm:$0xff] %v4219_v39  ;;  %v4222_v34 = vld [vmem:[%s3929_s15 + $0xb0] sm:$0xf]  ;;  %v4230_v25 = vld [vmem:[%s3929_s15 + $0xb4] sm:$0xf]  ;;  %s431_s18 = sshrl.u32 %s5286_s13, 16  ;;  %p836_p9 = scmp.ne.f32.partialorder %s4434_s9, %s4434_s9 }
  0xaa   : > { %v792_v48 = vmul.bf16 %v4197_v33, %v4134_v52  ;;  %v1040_v2 = vpack.c.bf16 %v962_v45, %v961_v55  ;;  %v793_v58 = vmul.bf16 %v4200_v41, %v4134_v52  ;;  %v935_v59 = vmul.bf16 %v4203_v44, %v4180_v47  ;;  %5177 = vst [vmem:[#allocation42_spill] sm:$0xff] %v4222_v34  ;;  %v4233_v63 = vld [vmem:[%s3929_s15 + $0xb8] sm:$0xf]  ;;  %v4242_v45 = vld [vmem:[%s3929_s15 + $0xbc] sm:$0xf]  ;;  %s432_s6 = sshll.u32 %s431_s18, 16  ;;  %p979_p10 = scmp.ne.f32.partialorder %s4436_s24, %s4436_s24 }
  0xab   : > { %v1041_v14 = vpack.c.bf16 %v964_v0, %v963_v40  ;;  %v1042_v17 = vpack.c.bf16 %v966_v54, %v965_v51  ;;  %v936_v62 = vmul.bf16 %v4206_v50, %v4180_v47  ;;  %v5178_v55 = vmul.bf16 %v3989_v12, %v4032_v30  ;;  %5179 = vst [vmem:[#allocation43_spill] sm:$0xff] %v4230_v25  ;;  %s433_s2 = sor.u32 %s432_s6, %s431_s18 }
  0xac   : > { %v808_v49 = vunpack.c.l.bf16 %v792_v48  ;;  %5180 = vst [vmem:[#allocation44_spill] sm:$0xff] %v4233_v63  ;;  %3241 = vmatprep.mubr.msk.bf16.mxu0 %vm1079_vm2, %v1040_v2  ;;  %v809_v13 = vunpack.c.l.bf16 %v793_v58  ;;  %v951_v18 = vunpack.c.l.bf16 %v935_v59  ;;  %v5181_v22 = vmul.bf16 %v3989_v12, %v4035_v31  ;;  %5182 = vst [vmem:[#allocation45_spill] sm:$0xff] %v4242_v45 }
  0xad   : > { %v413_v40 = vunpack.c.l.bf16 %v5178_v55  ;;  %v508_v29 = vmul.bf16 %v4212_v26, %v4046_v38  ;;  %3242 = vmatmul.mubr.msk.bf16.vlgmr.msra.gmra.mxu0 %vm1079_vm2, %v1041_v14  ;;  %v952_v51 = vunpack.c.l.bf16 %v936_v62  ;;  %v509_v54 = vmul.bf16 %v4219_v39, %v4046_v38  ;;  %v4269_v39 = vld [vmem:[%s3929_s15 + $0xd0] sm:$0xf] }
  0xae   : > { %v414_v27 = vunpack.c.l.bf16 %v5181_v22  ;;  %v824_v0 = vadd.f32 %v808_v49, %v681_v42  ;;  %v651_v48 = vmul.bf16 %v4222_v34, %v4091_v1  ;;  %3245 = vmatprep.mubr.msk.bf16.mxu0 %vm1079_vm2, %v1042_v17  ;;  %v825_v2 = vadd.f32 %v809_v13, %v682_v35  ;;  %v4255_v42 = vld [vmem:[%s3929_s15 + $0xc0] sm:$0xf]  ;;  %v4258_v49 = vld [vmem:[%s3929_s15 + $0xc4] sm:$0xf]  ;;  %v4263_v35 = vld [vmem:[%s3929_s15 + $0xc8] sm:$0xf] }
  0xaf   : > { %v524_v58 = vunpack.c.l.bf16 %v508_v29  ;;  %v652_v59 = vmul.bf16 %v4230_v25, %v4091_v1  ;;  %v794_v14 = vmul.bf16 %v4233_v63, %v4134_v52  ;;  %5183 = vst [vmem:[#allocation46_spill] sm:$0xff] %v4255_v42  ;;  %5184 = vst [vmem:[#allocation47_spill] sm:$0xff] %v4258_v49  ;;  %v525_v55 = vunpack.c.l.bf16 %v509_v54  ;;  %v4266_v13 = vld [vmem:[%s3929_s15 + $0xcc] sm:$0xf] }
  0xb0   : > { %v967_v62 = vadd.f32 %v951_v18, %v824_v0  ;;  %v667_v22 = vunpack.c.l.bf16 %v651_v48  ;;  %v795_v17 = vmul.bf16 %v4242_v45, %v4134_v52  ;;  %5185 = vst [vmem:[#allocation48_spill] sm:$0xff] %v4266_v13  ;;  %v968_v29 = vadd.f32 %v952_v51, %v825_v2  ;;  %5186 = vst [vmem:[#allocation49_spill] sm:$0xff] %v4269_v39  ;;  %v4276_v48 = vld [vmem:[%s3929_s15 + $0xd4] sm:$0xf]  ;;  %v4283_v2 = vld [vmem:[%s3929_s15 + $0xd8] sm:$0xf] }
  0xb1   : > { %v540_v25 = vadd.f32 %v524_v58, %v413_v40  ;;  %v668_v63 = vunpack.c.l.bf16 %v652_v59  ;;  %v810_v34 = vunpack.c.l.bf16 %v794_v14  ;;  %v541_v26 = vadd.f32 %v525_v55, %v414_v27  ;;  %5187 = vst [vmem:[#allocation50_spill] sm:$0xff] %v4276_v48  ;;  %5188 = vst [vmem:[#allocation51_spill] sm:$0xff] %v4283_v2  ;;  %v4286_v27 = vld [vmem:[%s3929_s15 + $0xdc] sm:$0xf] }
  0xb2   : > { %v811_v18 = vunpack.c.l.bf16 %v795_v17  ;;  %v937_v0 = vmul.bf16 %v4255_v42, %v4180_v47  ;;  %v938_v54 = vmul.bf16 %v4258_v49, %v4180_v47  ;;  %v1043_v45 = vpack.c.bf16 %v968_v29, %v967_v62  ;;  %5189 = vst [vmem:[#allocation52_spill] sm:$0xff] %v4286_v27  ;;  %v4291_v17 = vld [vmem:[%s3929_s15 + $0xe0] sm:$0xf]  ;;  %v4325_v49 = vld [vmem:[%s3929_s15 + $0xfc] sm:$0xf] }
  0xb3   : > { %v683_v50 = vadd.f32 %v667_v22, %v540_v25  ;;  %v399_v40 = vmul.bf16 %v3989_v12, %v4263_v35  ;;  %v400_v51 = vmul.bf16 %v3989_v12, %v4266_v13  ;;  %v684_v58 = vadd.f32 %v668_v63, %v541_v26  ;;  %5190 = vst [vmem:[#allocation53_spill] sm:$0xff] %v4291_v17  ;;  %v4294_v25 = vld [vmem:[%s3929_s15 + $0xe4] sm:$0xf] }
  0xb4   : > { %v953_v59 = vunpack.c.l.bf16 %v937_v0  ;;  %v954_v14 = vunpack.c.l.bf16 %v938_v54  ;;  %v510_v55 = vmul.bf16 %v4269_v39, %v4046_v38  ;;  %5191 = vst [vmem:[#allocation54_spill] sm:$0xff] %v4294_v25  ;;  %v511_v13 = vmul.bf16 %v4276_v48, %v4046_v38  ;;  %v4304_v39 = vld [vmem:[%s3929_s15 + $0xe8] sm:$0xf]  ;;  %v4317_v48 = vld [vmem:[%s3929_s15 + $0xf4] sm:$0xf]  ;;  %5195 = vst [vmem:[#allocation58_spill] sm:$0xff] %v4325_v49 }
  0xb5   : > { %v826_v62 = vadd.f32 %v810_v34, %v683_v50  ;;  %v415_v22 = vunpack.c.l.bf16 %v399_v40  ;;  %v416_v29 = vunpack.c.l.bf16 %v400_v51  ;;  %3246 = vmatmul.mubr.msk.bf16.gmra.mxu0 %vm1079_vm2, %v1043_v45  ;;  %v827_v26 = vadd.f32 %v811_v18, %v684_v58  ;;  %v4311_v18 = vld [vmem:[%s3929_s15 + $0xec] sm:$0xf]  ;;  %v4314_v51 = vld [vmem:[%s3929_s15 + $0xf0] sm:$0xf]  ;;  %5193 = vst [vmem:[#allocation56_spill] sm:$0xff] %v4317_v48 }
  0xb6   : > { %v526_v63 = vunpack.c.l.bf16 %v510_v55  ;;  %v653_v0 = vmul.bf16 %v4283_v2, %v4091_v1  ;;  %v654_v54 = vmul.bf16 %v4286_v27, %v4091_v1  ;;  %v527_v34 = vunpack.c.l.bf16 %v511_v13  ;;  %5192 = vst [vmem:[#allocation55_spill] sm:$0xff] %v4314_v51 }
  0xb7   : > { %v969_v50 = vadd.f32 %v953_v59, %v826_v62  ;;  %v796_v40 = vmul.bf16 %v4291_v17, %v4134_v52  ;;  %v797_v45 = vmul.bf16 %v4294_v25, %v4134_v52  ;;  %v970_v58 = vadd.f32 %v954_v14, %v827_v26  ;;  %v4320_v59 = vld [vmem:[%s3929_s15 + $0xf8] sm:$0xf] }
  0xb8   : > { %v542_v55 = vadd.f32 %v526_v63, %v415_v22  ;;  %v669_v2 = vunpack.c.l.bf16 %v653_v0  ;;  %v670_v27 = vunpack.c.l.bf16 %v654_v54  ;;  %5194 = vst [vmem:[#allocation57_spill] sm:$0xff] %v4320_v59  ;;  %v543_v13 = vadd.f32 %v527_v34, %v416_v29  ;;  %v4332_v63 = vld [vmem:[%s3929_s15 + $0x100] sm:$0xf] }
  0xb9   : > { %v812_v62 = vunpack.c.l.bf16 %v796_v40  ;;  %v813_v17 = vunpack.c.l.bf16 %v797_v45  ;;  %v939_v25 = vmul.bf16 %v4304_v39, %v4180_v47  ;;  %v1044_v42 = vpack.c.bf16 %v970_v58, %v969_v50  ;;  %5196 = vst [vmem:[#allocation59_spill] sm:$0xff] %v4332_v63  ;;  %v4339_v50 = vld [vmem:[%s3929_s15 + $0x104] sm:$0xf] }
  0xba   : > { %v685_v14 = vadd.f32 %v669_v2, %v542_v55  ;;  %v940_v22 = vmul.bf16 %v4311_v18, %v4180_v47  ;;  %v401_v26 = vmul.bf16 %v3989_v12, %v4314_v51  ;;  %v686_v0 = vadd.f32 %v670_v27, %v543_v13  ;;  %5197 = vst [vmem:[#allocation60_spill] sm:$0xff] %v4339_v50  ;;  %v4342_v2 = vld [vmem:[%s3929_s15 + $0x108] sm:$0xf]  ;;  %v4353_v51 = vld [vmem:[%s3929_s15 + $0x110] sm:$0xf] }
  0xbb   : > { %v955_v29 = vunpack.c.l.bf16 %v939_v25  ;;  %v402_v54 = vmul.bf16 %v3989_v12, %v4317_v48  ;;  %v512_v34 = vmul.bf16 %v4320_v59, %v4046_v38  ;;  %5198 = vst [vmem:[#allocation61_spill] sm:$0xff] %v4342_v2  ;;  %3249 = vmatprep.mubr.msk.bf16.mxu0 %vm1079_vm2, %v1044_v42  ;;  %v513_v27 = vmul.bf16 %v4325_v49, %v4046_v38  ;;  %v4348_v25 = vld [vmem:[%s3929_s15 + $0x10c] sm:$0xf]  ;;  %v4373_v49 = vld [vmem:[%s3929_s15 + $0x120] sm:$0xf] }
  0xbc   : > { %v828_v40 = vadd.f32 %v812_v62, %v685_v14  ;;  %v956_v45 = vunpack.c.l.bf16 %v940_v22  ;;  %v417_v58 = vunpack.c.l.bf16 %v401_v26  ;;  %5199 = vst [vmem:[#allocation62_spill] sm:$0xff] %v4348_v25  ;;  %v829_v55 = vadd.f32 %v813_v17, %v686_v0  ;;  %5200 = vst [vmem:[#allocation63_spill] sm:$0xff] %v4353_v51  ;;  %v4360_v26 = vld [vmem:[%s3929_s15 + $0x114] sm:$0xf] }
  0xbd   : > { %v418_v13 = vunpack.c.l.bf16 %v402_v54  ;;  %v528_v59 = vunpack.c.l.bf16 %v512_v34  ;;  %v655_v48 = vmul.bf16 %v4332_v63, %v4091_v1  ;;  %v529_v62 = vunpack.c.l.bf16 %v513_v27  ;;  %v4365_v63 = vld [vmem:[%s3929_s15 + $0x118] sm:$0xf]  ;;  %5203 = vst [vmem:[#allocation66_spill] sm:$0xff] %v4373_v49 }
  0xbe   : > { %v971_v42 = vadd.f32 %v955_v29, %v828_v40  ;;  %v656_v14 = vmul.bf16 %v4339_v50, %v4091_v1  ;;  %v798_v22 = vmul.bf16 %v4342_v2, %v4134_v52  ;;  %v972_v17 = vadd.f32 %v956_v45, %v829_v55  ;;  %5201 = vst [vmem:[#allocation64_spill] sm:$0xff] %v4365_v63  ;;  %v4368_v29 = vld [vmem:[%s3929_s15 + $0x11c] sm:$0xf]  ;;  %v4376_v45 = vld [vmem:[%s3929_s15 + $0x124] sm:$0xf] }
  0xbf   : > { %v544_v0 = vadd.f32 %v528_v59, %v417_v58  ;;  %v671_v54 = vunpack.c.l.bf16 %v655_v48  ;;  %v799_v34 = vmul.bf16 %v4348_v25, %v4134_v52  ;;  %5202 = vst [vmem:[#allocation65_spill] sm:$0xff] %v4368_v29  ;;  %v545_v40 = vadd.f32 %v529_v62, %v418_v13  ;;  %5204 = vst [vmem:[#allocation67_spill] sm:$0xff] %v4376_v45  ;;  %v4381_v25 = vld [vmem:[%s3929_s15 + $0x128] sm:$0xf] }
  0xc0   : > { %v672_v27 = vunpack.c.l.bf16 %v656_v14  ;;  %v814_v50 = vunpack.c.l.bf16 %v798_v22  ;;  %v941_v2 = vmul.bf16 %v4353_v51, %v4180_v47  ;;  %v1045_v48 = vpack.c.bf16 %v972_v17, %v971_v42  ;;  %5205 = vst [vmem:[#allocation68_spill] sm:$0xff] %v4381_v25  ;;  %v4388_v51 = vld [vmem:[%s3929_s15 + $0x12c] sm:$0xf] }
  0xc1   : > { %v687_v59 = vadd.f32 %v671_v54, %v544_v0  ;;  %v815_v58 = vunpack.c.l.bf16 %v799_v34  ;;  %v942_v55 = vmul.bf16 %v4360_v26, %v4180_v47  ;;  %v403_v14 = vmul.bf16 %v3989_v12, %v4365_v63  ;;  %5206 = vst [vmem:[#allocation69_spill] sm:$0xff] %v4388_v51  ;;  %v4399_v34 = vld [vmem:[%s3929_s15 + $0x134] sm:$0xf]  ;;  %v4409_v63 = vld [vmem:[%s3929_s15 + $0x13c] sm:$0xf] }
  0xc2   : > { %v688_v13 = vadd.f32 %v672_v27, %v545_v40  ;;  %v957_v62 = vunpack.c.l.bf16 %v941_v2  ;;  %v404_v22 = vmul.bf16 %v3989_v12, %v4368_v29  ;;  %3250 = vmatmul.mubr.msk.bf16.gmra.mxu0 %vm1079_vm2, %v1045_v48  ;;  %v514_v0 = vmul.bf16 %v4373_v49, %v4046_v38  ;;  %v4396_v2 = vld [vmem:[%s3929_s15 + $0x130] sm:$0xf]  ;;  %v4404_v48 = vld [vmem:[%s3929_s15 + $0x138] sm:$0xf]  ;;  %s552_s15 = sand.u32 1, %s551_s25 }
  0xc3   : > { %v830_v42 = vadd.f32 %v814_v50, %v687_v59  ;;  %v958_v17 = vunpack.c.l.bf16 %v942_v55  ;;  %v515_v54 = vmul.bf16 %v4376_v45, %v4046_v38  ;;  %5207 = vst [vmem:[#allocation70_spill] sm:$0xff] %v4396_v2  ;;  %v419_v27 = vunpack.c.l.bf16 %v403_v14  ;;  %s553_s10 = sadd.s32 32767, %s552_s15 }
  0xc4   : > { %v831_v40 = vadd.f32 %v815_v58, %v688_v13  ;;  %v420_v12 = vunpack.c.l.bf16 %v404_v22  ;;  %v657_v29 = vmul.bf16 %v4381_v25, %v4091_v1  ;;  %v530_v59 = vunpack.c.l.bf16 %v514_v0  ;;  %s554_s8 = sadd.s32 %s4430_s27, %s553_s10  ;;  %s980_s10 = sshrl.u32 %s4436_s24, 16 }
  0xc5   : > { %v973_v50 = vadd.f32 %v957_v62, %v830_v42  ;;  %v531_v55 = vunpack.c.l.bf16 %v515_v54  ;;  %v658_v49 = vmul.bf16 %v4388_v51, %v4091_v1  ;;  %v800_v58 = vmul.bf16 %v4396_v2, %v4134_v52  ;;  %s555_s28 = sand.u32 4294901760, %s554_s8  ;;  %s981_s18 = sand.u32 1, %s980_s10 }
  0xc6   : > { %v974_v38 = vadd.f32 %v958_v17, %v831_v40  ;;  %v673_v45 = vunpack.c.l.bf16 %v657_v29  ;;  %v801_v13 = vmul.bf16 %v4399_v34, %v4134_v52  ;;  %v546_v14 = vadd.f32 %v530_v59, %v419_v27  ;;  %s5288_s28 = smov (%p550_p6, %s555_s28), 2143289344 }
  0xc7   : > { %v547_v22 = vadd.f32 %v531_v55, %v420_v12  ;;  %v674_v25 = vunpack.c.l.bf16 %v658_v49  ;;  %v943_v62 = vmul.bf16 %v4404_v48, %v4180_v47  ;;  %v816_v0 = vunpack.c.l.bf16 %v800_v58  ;;  %s558_s6 = sshrl.u32 %s5288_s28, 16  ;;  %s982_s28 = sadd.s32 32767, %s981_s18 }
  0xc8   : > { %v1046_v42 = vpack.c.bf16 %v974_v38, %v973_v50  ;;  %v817_v54 = vunpack.c.l.bf16 %v801_v13  ;;  %v944_v1 = vmul.bf16 %v4409_v63, %v4180_v47  ;;  %v689_v17 = vadd.f32 %v673_v45, %v546_v14  ;;  %v3134_v50 = vld [vmem:[%s5086_s5] ss:$0 sm:$0xff] }
  0xc9   : > { %v690_v29 = vadd.f32 %v674_v25, %v547_v22  ;;  %v959_v40 = vunpack.c.l.bf16 %v943_v62 }
  0xca   : > { %3253 = vmatprep.mubr.msk.bf16.mxu0 %vm1079_vm2, %v1046_v42  ;;  %v960_v2 = vunpack.c.l.bf16 %v944_v1  ;;  %v832_v51 = vadd.f32 %v816_v0, %v689_v17 }
  0xcb   : > { %v833_v52 = vadd.f32 %v817_v54, %v690_v29 }
  0xcc   : > { %v975_v27 = vadd.f32 %v959_v40, %v832_v51 }
  0xcd   : > { %v976_v12 = vadd.f32 %v960_v2, %v833_v52 }
  0xcf   : > { %v1047_v49 = vpack.c.bf16 %v976_v12, %v975_v27 }
  0xd1   : > { %3254 = vmatmul.mubr.msk.bf16.gmra.mxu0 %vm1079_vm2, %v1047_v49 }
 0x16d   : > { %v3243_v59 = vpop.f32.mrf.mxu0 }
 0x16e   : > { %v1147_v55 = vadd.f32 %v3243_v59, %v3134_v50 }
 0x16f   : > { %v1138_v47 = vpop.f32.mrf.mxu0 }
 0x170   : > { %1378 = vxpose.xlu1.b32.start [1/2] (short) (narrow) %v1147_v55, 8  ;;  %v1139_v25 = vadd.f32 %v3134_v50, %v1138_v47 }
 0x171   : > { %v3244_v45 = vpop.f32.mrf.mxu0 }
 0x172   : > { %v1150_v38 = vadd.f32 %v3244_v45, %v3134_v50  ;;  %1346 = vxpose.xlu0.b32.start [1/2] (short) (narrow) %v1139_v25, 8  ;;  %v3509_v45 = vld [vmem:[%s5208_s3 + $0x8] sm:$0xff]  }
 0x173   : > { %v1141_v58 = vpop.f32.mrf.mxu0  ;;  %3257 = vmatprep.subr.bf16.mxu1 %v3509_v45 }
 0x174   : > { %v1142_v13 = vadd.f32 %v3134_v50, %v1141_v58  ;;  %1379 = vxpose.xlu1.b32.end [2/2] (short) (narrow) %v1150_v38, 8  ;;  %v3510_v38 = vld [vmem:[%s5208_s3] sm:$0xff]   ;;  %3258 = vmatpush3.bf16.msra.mxu1 %v3509_v45  ;;  %s695_s3 = sand.u32 1, %s694_s22 }
 0x175   : > { %v3247_v51 = vpop.f32.mrf.mxu0  ;;  %3259 = vmatprep.subr.bf16.mxu1 %v3510_v38  ;;  %s696_s16 = sadd.s32 32767, %s695_s3  ;;  %s559_s3 = sshll.u32 %s558_s6, 16 }
 0x176   : > { %v1163_v2 = vadd.f32 %v3247_v51, %v3134_v50  ;;  %1347 = vxpose.xlu0.b32.end [2/2] (short) (narrow) %v1142_v13, 8  ;;  %s560_s27 = sor.u32 %s559_s3, %s558_s6  ;;  %s983_s6 = sadd.s32 %s4436_s24, %s982_s28 }
 0x177   : > { %v1154_v14 = vpop.f32.mrf.mxu0 }
 0x178   : > { %v1155_v22 = vadd.f32 %v3134_v50, %v1154_v14  ;;  %1442 = vxpose.xlu1.b32.start [1/2] (short) (narrow) %v1163_v2, 8  ;;  %3260 = vmatpush3.bf16.msra.mxu1 %v3510_v38 }
 0x179   : > { %v3248_v62 = vpop.f32.mrf.mxu0 }
 0x17a   : > { %v1166_v42 = vadd.f32 %v3248_v62, %v3134_v50  ;;  %1410 = vxpose.xlu0.b32.start [1/2] (short) (narrow) %v1155_v22, 8 }
 0x17b   : > { %v1157_v0 = vpop.f32.mrf.mxu0 }
 0x17c   : > { %v1158_v54 = vadd.f32 %v3134_v50, %v1157_v0  ;;  %1443 = vxpose.xlu1.b32.end [2/2] (short) (narrow) %v1166_v42, 8 }
 0x17e   : > { %1411 = vxpose.xlu0.b32.end [2/2] (short) (narrow) %v1158_v54, 8 }
 0x182   : > { %v3251_v1 = vpop.f32.mrf.mxu0 }
 0x183   : > { %v1179_v17 = vadd.f32 %v3251_v1, %v3134_v50 }
 0x184   : > { %v1170_v29 = vpop.f32.mrf.mxu0 }
 0x185   : > { %v1171_v40 = vadd.f32 %v3134_v50, %v1170_v29  ;;  %1506 = vxpose.xlu1.b32.start [1/2] (short) (narrow) %v1179_v17, 8 }
 0x186   : > { %v3252_v52 = vpop.f32.mrf.mxu0 }
 0x187   : > { %v1182_v27 = vadd.f32 %v3252_v52, %v3134_v50  ;;  %1474 = vxpose.xlu0.b32.start [1/2] (short) (narrow) %v1171_v40, 8  ;;  %v4465_v52 = vstv %s560_s27 }
 0x188   : > { %v1173_v12 = vpop.f32.mrf.mxu0 }
 0x189   : > { %v1174_v49 = vadd.f32 %v3134_v50, %v1173_v12  ;;  %1507 = vxpose.xlu1.b32.end [2/2] (short) (narrow) %v1182_v27, 8  ;;  %v563_v12 = vmul.bf16 %v3999_v15, %v4465_v52  ;;  %v568_v15 = vmul.bf16 %v4025_v24, %v4465_v52 }
 0x18b   : > { %1475 = vxpose.xlu0.b32.end [2/2] (short) (narrow) %v1174_v49, 8  ;;  %v564_v49 = vmul.bf16 %v4002_v16, %v4465_v52  ;;  %v569_v16 = vmul.bf16 %v4041_v36, %v4465_v52  ;;  %v584_v24 = vunpack.c.l.bf16 %v568_v15 }
 0x18d   : > { %v580_v45 = vunpack.c.l.bf16 %v564_v49 }
 0x191   : > { %v3255_v59 = vpop.f32.mrf.mxu0 }
 0x192   : > { %v1195_v55 = vadd.f32 %v3255_v59, %v3134_v50  ;;  %v565_v59 = vmul.bf16 %v4011_v19, %v4465_v52  ;;  %v579_v19 = vunpack.c.l.bf16 %v563_v12 }
 0x193   : > { %v1186_v47 = vpop.f32.mrf.mxu0 }
 0x194   : > { %v1187_v25 = vadd.f32 %v3134_v50, %v1186_v47  ;;  %1570 = vxpose.xlu1.b32.start [1/2] (short) (narrow) %v1195_v55, 8  ;;  %v566_v55 = vmul.bf16 %v4014_v20, %v4465_v52  ;;  %v567_v47 = vmul.bf16 %v4022_v23, %v4465_v52  ;;  %v581_v20 = vunpack.c.l.bf16 %v565_v59 }
 0x195   : > { %v3256_v58 = vpop.f32.mrf.mxu0 }
 0x196   : > { %v1198_v13 = vadd.f32 %v3256_v58, %v3134_v50  ;;  %1538 = vxpose.xlu0.b32.start [1/2] (short) (narrow) %v1187_v25, 8  ;;  %v570_v25 = vmul.bf16 %v4044_v37, %v4465_v52  ;;  %v582_v38 = vunpack.c.l.bf16 %v566_v55  ;;  %v583_v23 = vunpack.c.l.bf16 %v567_v47 }
 0x197   : > { %v1189_v51 = vpop.f32.mrf.mxu0  ;;  %v585_v58 = vunpack.c.l.bf16 %v569_v16  ;;  %v5210_v16 = vld [vmem:[#allocation31_spill] sm:$0xff] }
 0x198   : > { %v1190_v2 = vadd.f32 %v3134_v50, %v1189_v51  ;;  %1571 = vxpose.xlu1.b32.end [2/2] (short) (narrow) %v1198_v13, 8  ;;  %v4443_v50 = vstv %s433_s2  ;;  %s697_s2 = sadd.s32 %s4432_s30, %s696_s16  ;;  %s838_s30 = sand.u32 1, %s837_s11  ;;  %v586_v13 = vunpack.c.l.bf16 %v570_v25 }
 0x199   : > { %v436_v14 = vmul.bf16 %v4443_v50, %v3962_v4  ;;  %v437_v22 = vmul.bf16 %v4443_v50, %v3965_v5  ;;  %v438_v62 = vmul.bf16 %v4443_v50, %v3971_v6  ;;  %v439_v42 = vmul.bf16 %v4443_v50, %v3974_v7  ;;  %s698_s22 = sand.u32 4294901760, %s697_s2  ;;  %s839_s12 = sadd.s32 32767, %s838_s30 }
 0x19a   : > { %1539 = vxpose.xlu0.b32.end [2/2] (short) (narrow) %v1190_v2, 8  ;;  %v440_v0 = vmul.bf16 %v4443_v50, %v3978_v8  ;;  %v441_v4 = vmul.bf16 %v4443_v50, %v3981_v9  ;;  %v442_v5 = vmul.bf16 %v4443_v50, %v3984_v10  ;;  %v443_v54 = vmul.bf16 %v4443_v50, %v3987_v11  ;;  %s5290_s22 = smov (%p693_p7, %s698_s22), 2143289344  ;;  %s840_s29 = sadd.s32 %s4434_s9, %s839_s12 }
 0x19b   : > { %v452_v6 = vunpack.c.l.bf16 %v436_v14  ;;  %v453_v1 = vunpack.c.l.bf16 %v437_v22  ;;  %v454_v7 = vunpack.c.l.bf16 %v438_v62  ;;  %v455_v17 = vunpack.c.l.bf16 %v439_v42  ;;  %s701_s26 = sshrl.u32 %s5290_s22, 16  ;;  %s841_s13 = sand.u32 4294901760, %s840_s29 }
 0x19c   : > { %v456_v8 = vunpack.c.l.bf16 %v440_v0  ;;  %v457_v29 = vunpack.c.l.bf16 %v441_v4  ;;  %v458_v9 = vunpack.c.l.bf16 %v442_v5  ;;  %v459_v40 = vunpack.c.l.bf16 %v443_v54  ;;  %s702_s25 = sshll.u32 %s701_s26, 16  ;;  %s5292_s13 = smov (%p836_p9, %s841_s13), 2143289344 }
 0x19d   : > { %v444_v10 = vmul.bf16 %v4443_v50, %v4032_v30  ;;  %v445_v11 = vmul.bf16 %v4443_v50, %v4035_v31  ;;  %v446_v27 = vmul.bf16 %v4443_v50, %v4263_v35  ;;  %s703_s15 = sor.u32 %s702_s25, %s701_s26  ;;  %v595_v36 = vadd.f32 %v579_v19, %v452_v6  ;;  %s844_s8 = sshrl.u32 %s5292_s13, 16  ;;  %v5221_v30 = vld [vmem:[#allocation42_spill] sm:$0xff]  ;;  %v5222_v31 = vld [vmem:[#allocation43_spill] sm:$0xff]  ;;  %v5231_v35 = vld [vmem:[#allocation52_spill] sm:$0xff] }
 0x19e   : > { %v596_v51 = vadd.f32 %v580_v45, %v453_v1  ;;  %v4495_v2 = vstv %s703_s15  ;;  %v597_v37 = vadd.f32 %v581_v20, %v454_v7  ;;  %v598_v62 = vadd.f32 %v582_v38, %v455_v17  ;;  %s845_s9 = sshll.u32 %s844_s8, 16  ;;  %s984_s2 = sand.u32 4294901760, %s983_s6 }
 0x19f   : > { %v706_v14 = vmul.bf16 %v4068_v46, %v4495_v2  ;;  %v707_v22 = vmul.bf16 %v4079_v53, %v4495_v2  ;;  %v708_v42 = vmul.bf16 %v4083_v56, %v4495_v2  ;;  %v709_v0 = vmul.bf16 %v4086_v57, %v4495_v2  ;;  %s846_s16 = sor.u32 %s845_s9, %s844_s8  ;;  %s5294_s2 = smov (%p979_p10, %s984_s2), 2143289344 }
 0x1a0   : > { %v599_v4 = vadd.f32 %v583_v23, %v456_v8  ;;  %v600_v5 = vadd.f32 %v584_v24, %v457_v29  ;;  %v710_v46 = vmul.bf16 %v4089_v60, %v4495_v2  ;;  %v711_v56 = vmul.bf16 %v4097_v3, %v4495_v2  ;;  %s987_s3 = sshrl.u32 %s5294_s2, 16  ;;  %s5250_s11 = scalar_lea.vmem (!%p3163_p11), [#allocation13], %s3942_s21 }
 0x1a1   : > { %v722_v54 = vunpack.c.l.bf16 %v706_v14  ;;  %v723_v53 = vunpack.c.l.bf16 %v707_v22  ;;  %v724_v6 = vunpack.c.l.bf16 %v708_v42  ;;  %v725_v1 = vunpack.c.l.bf16 %v709_v0  ;;  %s988_s24 = sshll.u32 %s987_s3, 16  ;;  %v5212_v42 = vld [vmem:[#allocation33_spill] sm:$0xff] }
 0x1a2   : > { %v726_v7 = vunpack.c.l.bf16 %v710_v46  ;;  %v601_v57 = vadd.f32 %v585_v58, %v458_v9  ;;  %v602_v17 = vadd.f32 %v586_v13, %v459_v40  ;;  %v4516_v12 = vstv %s846_s16  ;;  %v5209_v9 = vld [vmem:[#allocation30_spill] sm:$0xff]  ;;  %s989_s22 = sor.u32 %s988_s24, %s987_s3 }
 0x1a3   : > { %v738_v8 = vadd.f32 %v722_v54, %v595_v36  ;;  %v739_v29 = vadd.f32 %v723_v53, %v596_v51  ;;  %v740_v60 = vadd.f32 %v724_v6, %v597_v37  ;;  %v849_v49 = vmul.bf16 %v4109_v21, %v4516_v12  ;;  %v5215_v54 = vld [vmem:[#allocation36_spill] sm:$0xff] }
 0x1a4   : > { %v850_v59 = vmul.bf16 %v4116_v32, %v4516_v12  ;;  %v741_v3 = vadd.f32 %v725_v1, %v598_v62  ;;  %v851_v55 = vmul.bf16 %v4119_v43, %v4516_v12  ;;  %v852_v40 = vmul.bf16 %v5209_v9, %v4516_v12  ;;  %v5211_v32 = vld [vmem:[#allocation32_spill] sm:$0xff] }
 0x1a5   : > { %v727_v47 = vunpack.c.l.bf16 %v711_v56  ;;  %v742_v15 = vadd.f32 %v726_v7, %v599_v4  ;;  %v853_v25 = vmul.bf16 %v5210_v16, %v4516_v12  ;;  %v865_v19 = vunpack.c.l.bf16 %v849_v49  ;;  %v5213_v4 = vld [vmem:[#allocation34_spill] sm:$0xff]  ;;  %v5216_v56 = vld [vmem:[#allocation37_spill] sm:$0xff] }
 0x1a6   : > { %v866_v45 = vunpack.c.l.bf16 %v850_v59  ;;  %v867_v21 = vunpack.c.l.bf16 %v851_v55  ;;  %v854_v20 = vmul.bf16 %v5211_v32, %v4516_v12  ;;  %v868_v38 = vunpack.c.l.bf16 %v852_v40  ;;  %v5217_v7 = vld [vmem:[#allocation38_spill] sm:$0xff] }
 0x1a7   : > { %v743_v23 = vadd.f32 %v727_v47, %v600_v5  ;;  %v869_v24 = vunpack.c.l.bf16 %v853_v25  ;;  %v712_v43 = vmul.bf16 %v4149_v61, %v4495_v2  ;;  %v881_v58 = vadd.f32 %v865_v19, %v738_v8  ;;  %v5214_v61 = vld [vmem:[#allocation35_spill] sm:$0xff] }
 0x1a8   : > { %v882_v13 = vadd.f32 %v866_v45, %v739_v29  ;;  %v883_v36 = vadd.f32 %v867_v21, %v740_v60  ;;  %v870_v51 = vunpack.c.l.bf16 %v854_v20  ;;  %v4535_v37 = vstv %s989_s22 }
 0x1a9   : > { %v884_v14 = vadd.f32 %v868_v38, %v741_v3  ;;  %v885_v22 = vadd.f32 %v869_v24, %v742_v15  ;;  %v713_v62 = vmul.bf16 %v4164_v28, %v4495_v2  ;;  %v992_v0 = vmul.bf16 %v5212_v42, %v4535_v37 }
 0x1aa   : > { %v993_v5 = vmul.bf16 %v5213_v4, %v4535_v37  ;;  %v994_v46 = vmul.bf16 %v5214_v61, %v4535_v37  ;;  %v995_v53 = vmul.bf16 %v5215_v54, %v4535_v37  ;;  %v886_v6 = vadd.f32 %v870_v51, %v743_v23  ;;  %v5219_v51 = vld [vmem:[#allocation40_spill] sm:$0xff] }
 0x1ab   : > { %v996_v1 = vmul.bf16 %v5216_v56, %v4535_v37  ;;  %v997_v8 = vmul.bf16 %v5217_v7, %v4535_v37  ;;  %v728_v28 = vunpack.c.l.bf16 %v712_v43  ;;  %v1008_v29 = vunpack.c.l.bf16 %v992_v0 }
 0x1ac   : > { %v1009_v60 = vunpack.c.l.bf16 %v993_v5  ;;  %v1010_v49 = vunpack.c.l.bf16 %v994_v46  ;;  %v1011_v59 = vunpack.c.l.bf16 %v995_v53  ;;  %v729_v9 = vunpack.c.l.bf16 %v713_v62  ;;  %v5220_v62 = vld [vmem:[#allocation41_spill] sm:$0xff]  ;;  %v5223_v5 = vld [vmem:[#allocation44_spill] sm:$0xff] }
 0x1ad   : > { %v1012_v3 = vunpack.c.l.bf16 %v996_v1  ;;  %v1013_v55 = vunpack.c.l.bf16 %v997_v8  ;;  %v744_v40 = vadd.f32 %v728_v28, %v601_v57  ;;  %v1024_v47 = vadd.f32 %v1008_v29, %v881_v58  ;;  %v5218_v58 = vld [vmem:[#allocation39_spill] sm:$0xff] }
 0x1ae   : > { %v1025_v15 = vadd.f32 %v1009_v60, %v882_v13  ;;  %v1026_v16 = vadd.f32 %v1010_v49, %v883_v36  ;;  %v1027_v25 = vadd.f32 %v1011_v59, %v884_v14  ;;  %v745_v21 = vadd.f32 %v729_v9, %v602_v17  ;;  %v5225_v49 = vld [vmem:[#allocation46_spill] sm:$0xff] }
 0x1af   : > { %v1028_v19 = vadd.f32 %v1012_v3, %v885_v22  ;;  %v1029_v45 = vadd.f32 %v1013_v55, %v886_v6  ;;  %v855_v32 = vmul.bf16 %v4197_v33, %v4516_v12  ;;  %v856_v23 = vmul.bf16 %v4200_v41, %v4516_v12  ;;  %v5224_v6 = vld [vmem:[#allocation45_spill] sm:$0xff]  ;;  %v5226_v3 = vld [vmem:[#allocation47_spill] sm:$0xff] }
 0x1b0   : > { %v1048_v20 = vpack.c.bf16 %v1025_v15, %v1024_v47  ;;  %v1049_v38 = vpack.c.bf16 %v1027_v25, %v1026_v16  ;;  %v998_v24 = vmul.bf16 %v4203_v44, %v4535_v37  ;;  %v999_v13 = vmul.bf16 %v5218_v58, %v4535_v37  ;;  %v5227_v47 = vld [vmem:[#allocation48_spill] sm:$0xff] }
 0x1b1   : > { %v1050_v43 = vpack.c.bf16 %v1029_v45, %v1028_v19  ;;  %v871_v57 = vunpack.c.l.bf16 %v855_v32  ;;  %v460_v17 = vunpack.c.l.bf16 %v444_v10  ;;  %v872_v33 = vunpack.c.l.bf16 %v856_v23  ;;  %v5229_v23 = vld [vmem:[#allocation50_spill] sm:$0xff] }
 0x1b2   : > { %3261 = vmatprep.mubr.msk.bf16.mxu1 %vm1079_vm2, %v1048_v20  ;;  %v1014_v36 = vunpack.c.l.bf16 %v998_v24  ;;  %v461_v41 = vunpack.c.l.bf16 %v445_v11  ;;  %v571_v44 = vmul.bf16 %v5219_v51, %v4465_v52  ;;  %v1015_v22 = vunpack.c.l.bf16 %v999_v13 }
 0x1b3   : > { %3262 = vmatmul.mubr.msk.bf16.vlgmr.msra.gmra.mxu1 %vm1079_vm2, %v1049_v38  ;;  %v887_v14 = vadd.f32 %v871_v57, %v744_v40  ;;  %v572_v42 = vmul.bf16 %v5220_v62, %v4465_v52  ;;  %v714_v10 = vmul.bf16 %v5221_v30, %v4495_v2  ;;  %v888_v0 = vadd.f32 %v872_v33, %v745_v21  ;;  %v5228_v21 = vld [vmem:[#allocation49_spill] sm:$0xff] }
 0x1b4   : > { %3265 = vmatprep.mubr.msk.bf16.mxu1 %vm1079_vm2, %v1050_v43  ;;  %v587_v4 = vunpack.c.l.bf16 %v571_v44  ;;  %v715_v11 = vmul.bf16 %v5222_v31, %v4495_v2  ;;  %v857_v61 = vmul.bf16 %v5223_v5, %v4516_v12  ;;  %v858_v56 = vmul.bf16 %v5224_v6, %v4516_v12  ;;  %v5230_v43 = vld [vmem:[#allocation51_spill] sm:$0xff]  ;;  %v5233_v44 = vld [vmem:[#allocation54_spill] sm:$0xff] }
 0x1b5   : > { %v1030_v46 = vadd.f32 %v1014_v36, %v887_v14  ;;  %v588_v54 = vunpack.c.l.bf16 %v572_v42  ;;  %v730_v53 = vunpack.c.l.bf16 %v714_v10  ;;  %v1031_v1 = vadd.f32 %v1015_v22, %v888_v0 }
 0x1b6   : > { %v603_v7 = vadd.f32 %v587_v4, %v460_v17  ;;  %v731_v8 = vunpack.c.l.bf16 %v715_v11  ;;  %v873_v28 = vunpack.c.l.bf16 %v857_v61  ;;  %v874_v60 = vunpack.c.l.bf16 %v858_v56  ;;  %v5232_v17 = vld [vmem:[#allocation53_spill] sm:$0xff]  ;;  %v5234_v61 = vld [vmem:[#allocation55_spill] sm:$0xff] }
 0x1b7   : > { %v604_v29 = vadd.f32 %v588_v54, %v461_v41  ;;  %v1000_v59 = vmul.bf16 %v5225_v49, %v4535_v37  ;;  %v1001_v55 = vmul.bf16 %v5226_v3, %v4535_v37  ;;  %v1051_v9 = vpack.c.bf16 %v1031_v1, %v1030_v46  ;;  %v5235_v54 = vld [vmem:[#allocation56_spill] sm:$0xff]  ;;  %v5238_v3 = vld [vmem:[#allocation59_spill] sm:$0xff] }
 0x1b8   : > { %v746_v40 = vadd.f32 %v730_v53, %v603_v7  ;;  %v447_v15 = vmul.bf16 %v4443_v50, %v5227_v47  ;;  %v462_v16 = vunpack.c.l.bf16 %v446_v27  ;;  %v573_v32 = vmul.bf16 %v5228_v21, %v4465_v52  ;;  %v5236_v7 = vld [vmem:[#allocation57_spill] sm:$0xff] }
 0x1b9   : > { %v747_v25 = vadd.f32 %v731_v8, %v604_v29  ;;  %v1016_v19 = vunpack.c.l.bf16 %v1000_v59  ;;  %v1017_v45 = vunpack.c.l.bf16 %v1001_v55  ;;  %v574_v24 = vmul.bf16 %v5229_v23, %v4465_v52 }
 0x1ba   : > { %v889_v20 = vadd.f32 %v873_v28, %v746_v40  ;;  %v463_v38 = vunpack.c.l.bf16 %v447_v15  ;;  %v716_v57 = vmul.bf16 %v5230_v43, %v4495_v2  ;;  %v589_v13 = vunpack.c.l.bf16 %v573_v32 }
 0x1bb   : > { %3266 = vmatmul.mubr.msk.bf16.gmra.mxu1 %vm1079_vm2, %v1051_v9  ;;  %v890_v58 = vadd.f32 %v874_v60, %v747_v25  ;;  %v717_v27 = vmul.bf16 %v5231_v35, %v4495_v2  ;;  %v859_v33 = vmul.bf16 %v5232_v17, %v4516_v12  ;;  %v590_v41 = vunpack.c.l.bf16 %v574_v24  ;;  %v5239_v9 = vld [vmem:[#allocation60_spill] sm:$0xff] }
 0x1bc   : > { %v1032_v36 = vadd.f32 %v1016_v19, %v889_v20  ;;  %v732_v51 = vunpack.c.l.bf16 %v716_v57  ;;  %v860_v14 = vmul.bf16 %v5233_v44, %v4516_v12  ;;  %v605_v62 = vadd.f32 %v589_v13, %v462_v16  ;;  %v5240_v16 = vld [vmem:[#allocation61_spill] sm:$0xff]  ;;  %v5241_v19 = vld [vmem:[#allocation62_spill] sm:$0xff]  ;;  %v5242_v57 = vld [vmem:[#allocation63_spill] sm:$0xff] }
 0x1bd   : > { %v1033_v22 = vadd.f32 %v1017_v45, %v890_v58  ;;  %v733_v42 = vunpack.c.l.bf16 %v717_v27  ;;  %v875_v30 = vunpack.c.l.bf16 %v859_v33  ;;  %v606_v10 = vadd.f32 %v590_v41, %v463_v38  ;;  %v5243_v17 = vld [vmem:[#allocation64_spill] sm:$0xff] }
 0x1be   : > { %v876_v0 = vunpack.c.l.bf16 %v860_v14  ;;  %v1002_v4 = vmul.bf16 %v4304_v39, %v4535_v37  ;;  %v1003_v31 = vmul.bf16 %v4311_v18, %v4535_v37  ;;  %v748_v5 = vadd.f32 %v732_v51, %v605_v62  ;;  %v5237_v18 = vld [vmem:[#allocation58_spill] sm:$0xff]  ;;  %v5244_v51 = vld [vmem:[#allocation65_spill] sm:$0xff] }
 0x1bf   : > { %v1052_v11 = vpack.c.bf16 %v1033_v22, %v1032_v36  ;;  %v448_v46 = vmul.bf16 %v4443_v50, %v5234_v61  ;;  %v449_v53 = vmul.bf16 %v4443_v50, %v5235_v54  ;;  %v749_v6 = vadd.f32 %v733_v42, %v606_v10  ;;  %v5245_v14 = vld [vmem:[#allocation66_spill] sm:$0xff]  ;;  %v5246_v10 = vld [vmem:[#allocation67_spill] sm:$0xff] }
 0x1c0   : > { %v1018_v56 = vunpack.c.l.bf16 %v1002_v4  ;;  %v1019_v1 = vunpack.c.l.bf16 %v1003_v31  ;;  %v575_v8 = vmul.bf16 %v5236_v7, %v4465_v52  ;;  %v891_v39 = vadd.f32 %v875_v30, %v748_v5 }
 0x1c1   : > { %3269 = vmatprep.mubr.msk.bf16.mxu1 %vm1079_vm2, %v1052_v11  ;;  %v464_v28 = vunpack.c.l.bf16 %v448_v46  ;;  %v465_v29 = vunpack.c.l.bf16 %v449_v53  ;;  %v576_v60 = vmul.bf16 %v5237_v18, %v4465_v52  ;;  %v892_v49 = vadd.f32 %v876_v0, %v749_v6  ;;  %v5247_v11 = vld [vmem:[#allocation68_spill] sm:$0xff]  ;;  %v5249_v53 = vld [vmem:[#allocation70_spill] sm:$0xff] }
 0x1c2   : > { %v591_v59 = vunpack.c.l.bf16 %v575_v8  ;;  %v718_v55 = vmul.bf16 %v5238_v3, %v4495_v2  ;;  %v719_v40 = vmul.bf16 %v5239_v9, %v4495_v2  ;;  %v1034_v47 = vadd.f32 %v1018_v56, %v891_v39 }
 0x1c3   : > { %v592_v15 = vunpack.c.l.bf16 %v576_v60  ;;  %v861_v25 = vmul.bf16 %v5240_v16, %v4516_v12  ;;  %v862_v45 = vmul.bf16 %v5241_v19, %v4516_v12  ;;  %v1035_v21 = vadd.f32 %v1019_v1, %v892_v49 }
 0x1c4   : > { %v607_v32 = vadd.f32 %v591_v59, %v464_v28  ;;  %v734_v20 = vunpack.c.l.bf16 %v718_v55  ;;  %v735_v38 = vunpack.c.l.bf16 %v719_v40  ;;  %v1004_v58 = vmul.bf16 %v5242_v57, %v4535_v37 }
 0x1c5   : > { %v608_v23 = vadd.f32 %v592_v15, %v465_v29  ;;  %v877_v24 = vunpack.c.l.bf16 %v861_v25  ;;  %v878_v43 = vunpack.c.l.bf16 %v862_v45  ;;  %v1053_v13 = vpack.c.bf16 %v1035_v21, %v1034_v47 }
 0x1c6   : > { %v750_v35 = vadd.f32 %v734_v20, %v607_v32  ;;  %v1005_v27 = vmul.bf16 %v4360_v26, %v4535_v37  ;;  %v450_v33 = vmul.bf16 %v4443_v50, %v5243_v17  ;;  %v1020_v41 = vunpack.c.l.bf16 %v1004_v58 }
 0x1c7   : > { %v751_v36 = vadd.f32 %v735_v38, %v608_v23  ;;  %v451_v44 = vmul.bf16 %v4443_v50, %v5244_v51  ;;  %v577_v22 = vmul.bf16 %v5245_v14, %v4465_v52  ;;  %3270 = vmatmul.mubr.msk.bf16.gmra.mxu1 %vm1079_vm2, %v1053_v13  ;;  %v578_v0 = vmul.bf16 %v5246_v10, %v4465_v52  ;;  %v5248_v50 = vld [vmem:[#allocation69_spill] sm:$0xff] }
 0x1c8   : > { %v893_v62 = vadd.f32 %v877_v24, %v750_v35  ;;  %v1021_v42 = vunpack.c.l.bf16 %v1005_v27  ;;  %v466_v30 = vunpack.c.l.bf16 %v450_v33  ;;  %v720_v5 = vmul.bf16 %v5247_v11, %v4495_v2 }
 0x1c9   : > { %v894_v26 = vadd.f32 %v878_v43, %v751_v36  ;;  %v467_v4 = vunpack.c.l.bf16 %v451_v44  ;;  %v593_v31 = vunpack.c.l.bf16 %v577_v22  ;;  %v594_v46 = vunpack.c.l.bf16 %v578_v0 }
 0x1ca   : > { %v1036_v61 = vadd.f32 %v1020_v41, %v893_v62  ;;  %v721_v54 = vmul.bf16 %v5248_v50, %v4495_v2  ;;  %v863_v6 = vmul.bf16 %v5249_v53, %v4516_v12  ;;  %v736_v7 = vunpack.c.l.bf16 %v720_v5 }
 0x1cb   : > { %v1037_v56 = vadd.f32 %v1021_v42, %v894_v26  ;;  %v609_v1 = vadd.f32 %v593_v31, %v466_v30  ;;  %v864_v52 = vmul.bf16 %v4399_v34, %v4516_v12  ;;  %v610_v8 = vadd.f32 %v594_v46, %v467_v4 }
 0x1cc   : > { %v737_v39 = vunpack.c.l.bf16 %v721_v54  ;;  %v879_v28 = vunpack.c.l.bf16 %v863_v6  ;;  %v1006_v29 = vmul.bf16 %v4404_v48, %v4535_v37  ;;  %v1007_v2 = vmul.bf16 %v4409_v63, %v4535_v37 }
 0x1cd   : > { %v1054_v18 = vpack.c.bf16 %v1037_v56, %v1036_v61  ;;  %v752_v60 = vadd.f32 %v736_v7, %v609_v1  ;;  %v880_v49 = vunpack.c.l.bf16 %v864_v52  ;;  %v3730_v58 = vmov 0.0  }
 0x1ce   : > { %v753_v59 = vadd.f32 %v737_v39, %v610_v8  ;;  %v1022_v3 = vunpack.c.l.bf16 %v1006_v29  ;;  %v1023_v9 = vunpack.c.l.bf16 %v1007_v2  ;;  %3277 = vmatprep.subr.bf16.mxu0 %v3730_v58  ;;  %3283 = vmatprep.subr.bf16.mxu1 %v3730_v58  ;;  %v1636_v35 = vlaneseq  ;;  %v1602_v8 = vld [vmem:[#allocation2] sm:$0xff] }
 0x1cf   : > { %3273 = vmatprep.mubr.msk.bf16.mxu1 %vm1079_vm2, %v1054_v18  ;;  %v895_v55 = vadd.f32 %v879_v28, %v752_v60  ;;  %3279 = vmatprep.mubr.msk.bf16.mxu0 %vm3731_vm12, %v3730_v58 }
 0x1d0   : > { %v896_v40 = vadd.f32 %v880_v49, %v753_v59  ;;  %v1637_v41 = vand.u32 127, %v1636_v35  ;;  %v1639_v51 = vshrl.u32 %v1636_v35, 7 }
 0x1d1   : > { %v1038_v34 = vadd.f32 %v1022_v3, %v895_v55 }
 0x1d2   : > { %v1039_v12 = vadd.f32 %v1023_v9, %v896_v40  ;;  %v4685_v62 = vsub.s32 %v1637_v41, %v1639_v51  ;;  %v4702_v28 = vsub.s32 1, %v1639_v51  ;;  %v4704_v29 = vsub.s32 0, %v1639_v51 }
 0x1d3   : > { %v4707_v49 = vsub.s32 2, %v1639_v51  ;;  %v4712_v55 = vsub.s32 3, %v1639_v51  ;;  %v4714_v40 = vsub.s32 4, %v1639_v51 }
 0x1d4   : > { %v1055_v47 = vpack.c.bf16 %v1039_v12, %v1038_v34 }
 0x1d6   : > { %3274 = vmatmul.mubr.msk.bf16.gmra.mxu1 %vm1079_vm2, %v1055_v47  ;;  %v4718_v47 = vsub.s32 5, %v1639_v51 }
 0x1d7   : > { %3285 = vmatprep.mubr.msk.bf16.mxu1 %vm3731_vm12, %v3730_v58 }
 0x1ec   : > { %v4650_v48 = vpop.trf.xlu1 }
 0x1ed   : > { %v1607_v15 = vsel %vm1603_vm3, %v4650_v48, -inf }
 0x1ee   : > { %1608 = vmax.xlane.f32.xlu1 %v1607_v15  ;;  %v4654_v63 = vpop.trf.xlu0  ;;  %v4720_v15 = vsub.s32 6, %v1639_v51 }
 0x1ef   : > { %v1604_v37 = vsel %vm1603_vm3, %v4654_v63, -inf }
 0x1f0   : > { %1605 = vmax.xlane.f32.xlu0 %v1604_v37 }
 0x1f4   : > { %v4658_v16 = vpop.trf.xlu1 }
 0x1f5   : > { %v1613_v25 = vsel %vm1603_vm3, %v4658_v16, -inf }
 0x1f6   : > { %1614 = vmax.xlane.f32.xlu1 %v1613_v25  ;;  %v4662_v19 = vpop.trf.xlu0 }
 0x1f7   : > { %v1610_v45 = vsel %vm1603_vm3, %v4662_v19, -inf }
 0x1fa   : > { %1611 = vmax.xlane.f32.xlu1 %v1610_v45  ;;  %v4724_v45 = vsub.s32 7, %v1639_v51 }
 0x201   : > { %v4666_v21 = vpop.trf.xlu1 }
 0x202   : > { %v1619_v32 = vsel %vm1603_vm3, %v4666_v21, -inf }
 0x203   : > { %v4670_v20 = vpop.trf.xlu0  ;;  %1620 = vmax.xlane.f32.xlu1 %v1619_v32 }
 0x204   : > { %v1616_v38 = vsel %vm1603_vm3, %v4670_v20, -inf }
 0x205   : > { %1617 = vmax.xlane.f32.xlu0 %v1616_v38 }
 0x210   : > { %v4674_v23 = vpop.trf.xlu1 }
 0x211   : > { %v1625_v24 = vsel %vm1603_vm3, %v4674_v23, -inf }
 0x212   : > { %v4678_v43 = vpop.trf.xlu0  ;;  %1626 = vmax.xlane.f32.xlu1 %v1625_v24 }
 0x213   : > { %v1622_v57 = vsel %vm1603_vm3, %v4678_v43, -inf }
 0x214   : > { %1623 = vmax.xlane.f32.xlu0 %v1622_v57 }
 0x273   : > { %v3263_v13 = vpop.f32.mrf.mxu1 }
 0x275   : > { %v1275_v17 = vpop.f32.mrf.mxu1 }
 0x277   : > { %v1609_v27 = vpop.xlane.xlu1 %1608  ;;  %v3264_v33 = vpop.f32.mrf.mxu1 }
 0x278   : > { %v1339_v36 = vpack.c.bf16 %v3264_v33, %v3263_v13  ;;  %v1645_v30 = vrot.slane %v1609_v27, %v4685_v62 }
 0x279   : > { %v1278_v44 = vpop.f32.mrf.mxu1  ;;  %v1606_v42 = vpop.xlane.xlu0 %1605 }
 0x27a   : > { %v1338_v14 = vpack.c.bf16 %v1278_v44, %v1275_v17  ;;  %3284 = vmatpush3.bf16.msra.mxu1 %v1339_v36  ;;  %v1641_v10 = vrot.slane %v1606_v42, %v4685_v62 }
 0x27b   : > { %3295 = vmatprep.subr.bf16.mxu1 %v3730_v58  ;;  %v3267_v51 = vpop.f32.mrf.mxu1 }
 0x27c   : > { %3278 = vmatpush3.bf16.msra.mxu0 %v1338_v14  ;;  %v1671_v4 = vsel %vm1670_vm4, %v1645_v30, %v1641_v10 }
 0x27d   : > { %3289 = vmatprep.subr.bf16.mxu0 %v3730_v58  ;;  %v1291_v44 = vpop.f32.mrf.mxu1 }
 0x27f   : > { %v1615_v22 = vpop.xlane.xlu1 %1614  ;;  %v3268_v14 = vpop.f32.mrf.mxu1 }
 0x280   : > { %v1653_v11 = vrot.slane %v1615_v22, %v4685_v62 }
 0x281   : > { %v1294_v22 = vpop.f32.mrf.mxu1 }
 0x283   : > { %v1612_v0 = vpop.xlane.xlu1 %1611 }
 0x284   : > { %v1649_v26 = vrot.slane %v1612_v0, %v4685_v62 }
 0x286   : > { %v1673_v61 = vsel %vm1672_vm5, %v1649_v26, %v1671_v4 }
 0x287   : > { %v1675_v50 = vsel %vm1674_vm6, %v1653_v11, %v1673_v61 }
 0x28c   : > { %v1621_v5 = vpop.xlane.xlu1 %1620 }
 0x28d   : > { %v1661_v54 = vrot.slane %v1621_v5, %v4685_v62 }
 0x28e   : > { %v1618_v31 = vpop.xlane.xlu0 %1617 }
 0x28f   : > { %v1657_v46 = vrot.slane %v1618_v31, %v4685_v62  ;;  %v4752_v31 = vpop.f32.mrf.mxu1 }
 0x291   : > { %v1677_v6 = vsel %vm1676_vm7, %v1657_v46, %v1675_v50 }
 0x292   : > { %v1679_v52 = vsel %vm1678_vm8, %v1661_v54, %v1677_v6 }
 0x29b   : > { %v1627_v53 = vpop.xlane.xlu1 %1626 }
 0x29c   : > { %v1669_v1 = vrot.slane %v1627_v53, %v4685_v62  ;;  %v4756_v53 = vpop.f32.mrf.mxu1 }
 0x29d   : > { %v1624_v56 = vpop.xlane.xlu0 %1623 }
 0x29e   : > { %v1665_v7 = vrot.slane %v1624_v56, %v4685_v62 }
 0x2a0   : > { %v1681_v39 = vsel %vm1680_vm9, %v1665_v7, %v1679_v52  ;;  %v3272_v52 = vpop.f32.mrf.mxu1 }
 0x2a1   : > { %v1683_v18 = vsel %vm1682_vm10, %v1669_v1, %v1681_v39 }
 0x2a2   : > { %v1685_v60 = vmax.f32 %v1602_v8, %v1683_v18 }
 0x2a4   : > { %v1686_v2 = vsub.f32 %v1602_v8, %v1685_v60  ;;  %1846 = vst.msk [vmem:[#allocation2] sm:$0xff] %vm1844_vm11, %v1685_v60  ;;  %v1699_v59 = vrot.slane %v1685_v60, %v4702_v28  ;;  %v1692_v3 = vrot.slane %v1685_v60, %v4704_v29  ;;  %v1706_v34 = vrot.slane %v1685_v60, %v4707_v49 }
 0x2a5   : > { %v1713_v12 = vrot.slane %v1685_v60, %v4712_v55  ;;  %v1720_v37 = vrot.slane %v1685_v60, %v4714_v40  ;;  %v1727_v25 = vrot.slane %v1685_v60, %v4718_v47  ;;  %v1734_v32 = vrot.slane %v1685_v60, %v4720_v15 }
 0x2a6   : > { %v1687_v9 = vmul.f32 1.442695, %v1686_v2  ;;  %1701 = vbcast.lane.b32.xlu1 %v1699_v59, 256  ;;  %1694 = vbcast.lane.b32.xlu0 %v1692_v3, 256  ;;  %v1741_v38 = vrot.slane %v1685_v60, %v4724_v45  ;;  %v1310_v2 = vpop.f32.mrf.mxu1 }
 0x2a8   : > { %3511 = vpow2.f32 %v1687_v9  ;;  %v1340_v9 = vpack.c.bf16 %v1294_v22, %v1291_v44 }
 0x2aa   : > { %1708 = vbcast.lane.b32.xlu1 %v1706_v34, 256  ;;  %1715 = vbcast.lane.b32.xlu0 %v1713_v12, 256 }
 0x2ae   : > { %1722 = vbcast.lane.b32.xlu1 %v1720_v37, 256  ;;  %1729 = vbcast.lane.b32.xlu0 %v1727_v25, 256 }
 0x2b2   : > { %1736 = vbcast.lane.b32.xlu1 %v1734_v32, 256  ;;  %1743 = vbcast.lane.b32.xlu0 %v1741_v38, 256 }
 0x2b5   : > { %v4732_v24 = vpop.eup %3511 }
 0x2b6   : > { %v2209_v57 = vrot.slane %v4732_v24, %v4702_v28  ;;  %v2202_v13 = vrot.slane %v4732_v24, %v4704_v29  ;;  %v2244_v35 = vrot.slane %v4732_v24, %v4720_v15  ;;  %v2251_v27 = vrot.slane %v4732_v24, %v4724_v45 }
 0x2b7   : > { %v2216_v17 = vrot.slane %v4732_v24, %v4707_v49  ;;  %v2223_v33 = vrot.slane %v4732_v24, %v4712_v55  ;;  %v2230_v36 = vrot.slane %v4732_v24, %v4714_v40  ;;  %v2237_v41 = vrot.slane %v4732_v24, %v4718_v47 }
 0x2b8   : > { %2211 = vbcast.lane.b32.xlu1 %v2209_v57, 256  ;;  %2204 = vbcast.lane.b32.xlu0 %v2202_v13, 256 }
 0x2bc   : > { %2218 = vbcast.lane.b32.xlu1 %v2216_v17, 256  ;;  %2225 = vbcast.lane.b32.xlu0 %v2223_v33, 256  ;;  %v1343_v17 = vpack.c.bf16 %v3272_v52, %v4752_v31 }
 0x2c0   : > { %2232 = vbcast.lane.b32.xlu1 %v2230_v36, 256  ;;  %2239 = vbcast.lane.b32.xlu0 %v2237_v41, 256  ;;  %v1342_v36 = vpack.c.bf16 %v1310_v2, %v4756_v53 }
 0x318   : > { %v1702_v42 = vpop.permute.xlu1 %1701  ;;  %v1695_v30 = vpop.permute.xlu0 %1694 }
 0x319   : > { %v1746_v10 = vsub.f32 %v4650_v48, %v1702_v42  ;;  %v1745_v0 = vsub.f32 %v4654_v63, %v1695_v30 }
 0x31b   : > { %v1755_v26 = vmul.f32 1.442695, %v1746_v10  ;;  %v1753_v4 = vmul.f32 1.442695, %v1745_v0 }
 0x31c   : > { %v1709_v11 = vpop.permute.xlu1 %1708  ;;  %v1716_v5 = vpop.permute.xlu0 %1715 }
 0x31d   : > { %3513 = vpow2.f32 %v1755_v26  ;;  %v1747_v61 = vsub.f32 %v4662_v19, %v1709_v11  ;;  %v1748_v46 = vsub.f32 %v4658_v16, %v1716_v5 }
 0x31e   : > { %3515 = vpow2.f32 %v1753_v4 }
 0x31f   : > { %v1757_v50 = vmul.f32 1.442695, %v1747_v61  ;;  %v1759_v54 = vmul.f32 1.442695, %v1748_v46 }
 0x320   : > { %v1723_v6 = vpop.permute.xlu1 %1722  ;;  %v1730_v48 = vpop.permute.xlu0 %1729 }
 0x321   : > { %3517 = vpow2.f32 %v1757_v50  ;;  %v1749_v63 = vsub.f32 %v4670_v20, %v1723_v6  ;;  %v1750_v56 = vsub.f32 %v4666_v21, %v1730_v48  ;;  %v1341_v20 = vpack.c.bf16 %v3268_v14, %v3267_v51 }
 0x322   : > { %3519 = vpow2.f32 %v1759_v54 }
 0x323   : > { %v1761_v1 = vmul.f32 1.442695, %v1749_v63  ;;  %v1763_v7 = vmul.f32 1.442695, %v1750_v56 }
 0x324   : > { %v1737_v8 = vpop.permute.xlu1 %1736  ;;  %v1744_v19 = vpop.permute.xlu0 %1743 }
 0x325   : > { %3521 = vpow2.f32 %v1761_v1  ;;  %v1751_v16 = vsub.f32 %v4678_v43, %v1737_v8  ;;  %v1752_v39 = vsub.f32 %v4674_v23, %v1744_v19  ;;  %v3275_v43 = vpop.f32.mrf.mxu1 }
 0x326   : > { %3523 = vpow2.f32 %v1763_v7 }
 0x327   : > { %v1765_v18 = vmul.f32 1.442695, %v1751_v16  ;;  %v1767_v60 = vmul.f32 1.442695, %v1752_v39  ;;  %v1323_v38 = vpop.f32.mrf.mxu1 }
 0x329   : > { %3525 = vpow2.f32 %v1765_v18  ;;  %v3276_v44 = vpop.f32.mrf.mxu1 }
 0x32a   : > { %v3514_v59 = vpop.eup %3513  ;;  %3527 = vpow2.f32 %v1767_v60  ;;  %v1345_v4 = vpack.c.bf16 %v3276_v44, %v3275_v43  ;;  %v2205_v50 = vpop.permute.xlu0 %2204 }
 0x32b   : > { %v3516_v21 = vpop.eup %3515  ;;  %v1848_v3 = vpack.c.bf16 %v3514_v59, %v3514_v59  ;;  %v1774_v34 = vsel %vm1603_vm3, %v3514_v59, 0.0  ;;  %v1326_v0 = vpop.f32.mrf.mxu1 }
 0x32c   : > { %v1847_v12 = vpack.c.bf16 %v3516_v21, %v3516_v21  ;;  %v1771_v37 = vsel %vm1603_vm3, %v3516_v21, 0.0  ;;  %1775 = vadd.xlane.f32.xlu0 %v1774_v34  ;;  %v1344_v31 = vpack.c.bf16 %v1326_v0, %v1323_v38  ;;  %v2212_v54 = vpop.permute.xlu1 %2211  ;;  %v1769_v21 = vld [vmem:[#allocation3] sm:$0xff]  ;;  %v2256_v38 = vld [vmem:[#allocation4 + $0x8] sm:$0xff] }
 0x32d   : > { %1772 = vadd.xlane.f32.xlu1 %v1771_v37  ;;  %3286 = vmatmul.mubr.msk.bf16.vlgmr.msra.gmra.mxu1 %vm1603_vm3, %v1848_v3  ;;  %v1770_v43 = vmul.f32 %v4732_v24, %v1769_v21  ;;  %v2258_v24 = vld [vmem:[#allocation4 + $0x18] sm:$0xff] }
 0x32e   : > { %v3518_v23 = vpop.eup %3517  ;;  %3280 = vmatmul.mubr.msk.bf16.vlgmr.msra.gmra.mxu0 %vm1603_vm3, %v1847_v12  ;;  %3296 = vmatpush3.bf16.msra.mxu1 %v1341_v20  ;;  %v2226_v53 = vpop.permute.xlu0 %2225 }
 0x32f   : > { %v3520_v25 = vpop.eup %3519  ;;  %3290 = vmatpush3.bf16.msra.mxu0 %v1340_v9  ;;  %v1777_v32 = vsel %vm1603_vm3, %v3518_v23, 0.0  ;;  %3291 = vmatprep.mubr.msk.bf16.mxu0 %vm3731_vm12, %v3730_v58  ;;  %v1849_v22 = vpack.c.bf16 %v3518_v23, %v3518_v23 }
 0x330   : > { %v1780_v57 = vsel %vm1603_vm3, %v3520_v25, 0.0  ;;  %1778 = vadd.xlane.f32.xlu0 %v1777_v32  ;;  %3297 = vmatprep.mubr.msk.bf16.mxu1 %vm3731_vm12, %v3730_v58  ;;  %v1850_v51 = vpack.c.bf16 %v3520_v25, %v3520_v25  ;;  %v2219_v6 = vpop.permute.xlu1 %2218 }
 0x331   : > { %1781 = vadd.xlane.f32.xlu1 %v1780_v57  ;;  %3301 = vmatprep.subr.bf16.mxu0 %v3730_v58  ;;  %v2255_v57 = vld [vmem:[#allocation4] sm:$0xff] }
 0x332   : > { %v3522_v13 = vpop.eup %3521  ;;  %3307 = vmatprep.subr.bf16.mxu1 %v3730_v58  ;;  %v2240_v48 = vpop.permute.xlu0 %2239 }
 0x333   : > { %v3524_v33 = vpop.eup %3523  ;;  %v1783_v41 = vsel %vm1603_vm3, %v3522_v13, 0.0  ;;  %v1851_v5 = vpack.c.bf16 %v3522_v13, %v3522_v13  ;;  %v2264_v13 = vmul.f32 %v2256_v38, %v2212_v54 }
 0x334   : > { %v1786_v14 = vsel %vm1603_vm3, %v3524_v33, 0.0  ;;  %1784 = vadd.xlane.f32.xlu0 %v1783_v41  ;;  %v1852_v11 = vpack.c.bf16 %v3524_v33, %v3524_v33 }
 0x335   : > { %1787 = vadd.xlane.f32.xlu1 %v1786_v14  ;;  %3298 = vmatmul.mubr.msk.bf16.vlgmr.msra.gmra.mxu1 %vm1603_vm3, %v1850_v51 }
 0x336   : > { %v3526_v42 = vpop.eup %3525  ;;  %3292 = vmatmul.mubr.msk.bf16.vlgmr.msra.gmra.mxu0 %vm1603_vm3, %v1849_v22  ;;  %3308 = vmatpush3.bf16.msra.mxu1 %v1343_v17  ;;  %v2263_v17 = vmul.f32 %v2255_v57, %v2205_v50  ;;  %v2257_v22 = vld [vmem:[#allocation4 + $0x10] sm:$0xff]  ;;  %v2260_v50 = vld [vmem:[#allocation4 + $0x28] sm:$0xff] }
 0x337   : > { %v3528_v30 = vpop.eup %3527  ;;  %3302 = vmatpush3.bf16.msra.mxu0 %v1342_v36  ;;  %v1789_v10 = vsel %vm1603_vm3, %v3526_v42, 0.0  ;;  %3303 = vmatprep.mubr.msk.bf16.mxu0 %vm3731_vm12, %v3730_v58  ;;  %v1853_v46 = vpack.c.bf16 %v3526_v42, %v3526_v42 }
 0x338   : > { %v1792_v26 = vsel %vm1603_vm3, %v3528_v30, 0.0  ;;  %1790 = vadd.xlane.f32.xlu0 %v1789_v10  ;;  %3309 = vmatprep.mubr.msk.bf16.mxu1 %vm3731_vm12, %v3730_v58  ;;  %v1854_v61 = vpack.c.bf16 %v3528_v30, %v3528_v30  ;;  %v2266_v10 = vmul.f32 %v2258_v24, %v2226_v53 }
 0x339   : > { %1793 = vadd.xlane.f32.xlu1 %v1792_v26  ;;  %3313 = vmatprep.subr.bf16.mxu0 %v3730_v58  ;;  %v2265_v26 = vmul.f32 %v2257_v22, %v2219_v6 }
 0x33a   : > { %3319 = vmatprep.subr.bf16.mxu1 %v3730_v58 }
 0x33d   : > { %3310 = vmatmul.mubr.msk.bf16.vlgmr.msra.gmra.mxu1 %vm1603_vm3, %v1852_v11 }
 0x33e   : > { %3304 = vmatmul.mubr.msk.bf16.vlgmr.msra.gmra.mxu0 %vm1603_vm3, %v1851_v5  ;;  %3320 = vmatpush3.bf16.msra.mxu1 %v1345_v4 }
 0x33f   : > { %3314 = vmatpush3.bf16.msra.mxu0 %v1344_v31  ;;  %3315 = vmatprep.mubr.msk.bf16.mxu0 %vm3731_vm12, %v3730_v58 }
 0x340   : > { %3321 = vmatprep.mubr.msk.bf16.mxu1 %vm3731_vm12, %v3730_v58  ;;  %v4802_v58 = vpop.permute.xlu1 %2232 }
 0x345   : > { %3322 = vmatmul.mubr.msk.bf16.vlgmr.msra.gmra.mxu1 %vm1603_vm3, %v1854_v61 }
 0x346   : > { %3316 = vmatmul.mubr.msk.bf16.vlgmr.msra.gmra.mxu0 %vm1603_vm3, %v1853_v46 }
 0x34a   : > { %2246 = vbcast.lane.b32.xlu1 %v2244_v35, 256 }
 0x34e   : > { %2253 = vbcast.lane.b32.xlu0 %v2251_v27, 256 }
 0x3b5   : > { %v1776_v63 = vpop.xlane.xlu0 %1775 }
 0x3b6   : > { %v1773_v56 = vpop.xlane.xlu1 %1772  ;;  %v1810_v7 = vrot.slane %v1776_v63, %v4685_v62  ;;  %v2259_v63 = vld [vmem:[#allocation4 + $0x20] sm:$0xff] }
 0x3b7   : > { %v1806_v1 = vrot.slane %v1773_v56, %v4685_v62  ;;  %v2267_v53 = vmul.f32 %v2259_v63, %v4802_v58 }
 0x3b9   : > { %v1779_v52 = vpop.xlane.xlu0 %1778  ;;  %v1835_v19 = vsel %vm1670_vm4, %v1810_v7, %v1806_v1  ;;  %v2268_v7 = vmul.f32 %v2260_v50, %v2240_v48 }
 0x3ba   : > { %v1782_v8 = vpop.xlane.xlu1 %1781  ;;  %v1814_v35 = vrot.slane %v1779_v52, %v4685_v62 }
 0x3bb   : > { %v1818_v27 = vrot.slane %v1782_v8, %v4685_v62 }
 0x3bc   : > { %v1836_v16 = vsel %vm1672_vm5, %v1814_v35, %v1835_v19 }
 0x3bd   : > { %v1785_v39 = vpop.xlane.xlu0 %1784  ;;  %v1837_v59 = vsel %vm1674_vm6, %v1818_v27, %v1836_v16 }
 0x3be   : > { %v1788_v18 = vpop.xlane.xlu1 %1787  ;;  %v1822_v60 = vrot.slane %v1785_v39, %v4685_v62  ;;  %v2262_v39 = vld [vmem:[#allocation4 + $0x38] sm:$0xff] }
 0x3bf   : > { %v1826_v2 = vrot.slane %v1788_v18, %v4685_v62 }
 0x3c0   : > { %v1838_v20 = vsel %vm1676_vm7, %v1822_v60, %v1837_v59 }
 0x3c1   : > { %v1791_v3 = vpop.xlane.xlu0 %1790  ;;  %v1839_v37 = vsel %vm1678_vm8, %v1826_v2, %v1838_v20  ;;  %v2261_v2 = vld [vmem:[#allocation4 + $0x30] sm:$0xff] }
 0x3c2   : > { %v1794_v9 = vpop.xlane.xlu1 %1793  ;;  %v1830_v34 = vrot.slane %v1791_v3, %v4685_v62 }
 0x3c3   : > { %v1834_v12 = vrot.slane %v1794_v9, %v4685_v62 }
 0x3c4   : > { %v1840_v23 = vsel %vm1680_vm9, %v1830_v34, %v1839_v37 }
 0x3c5   : > { %v1841_v25 = vsel %vm1682_vm10, %v1834_v12, %v1840_v23  ;;  %v2254_v18 = vpop.permute.xlu0 %2253 }
 0x3c6   : > { %v1843_v32 = vadd.f32 %v1841_v25, %v1770_v43  ;;  %v2247_v59 = vpop.permute.xlu1 %2246  ;;  %v2270_v21 = vmul.f32 %v2262_v39, %v2254_v18 }
 0x3c7   : > { %v2269_v58 = vmul.f32 %v2261_v2, %v2247_v59 }
 0x3c8   : > { %1845 = vst.msk [vmem:[#allocation3] sm:$0xff] %vm1844_vm11, %v1843_v32 }
 0x3ed   : > { %v1935_v33 = vpop.f32.mrf.mxu1 }
 0x3ee   : > { %v1892_v36 = vpop.f32.mrf.mxu0  ;;  %v2272_v41 = vadd.f32 %v2264_v13, %v1935_v33 }
 0x3ef   : > { %v2271_v51 = vadd.f32 %v2263_v17, %v1892_v36  ;;  %v3287_v62 = vpop.f32.mrf.mxu1 }
 0x3f0   : > { %2280 = vst.msk [vmem:[#allocation4 + $0x8] sm:$0xff] %vm1603_vm3, %v2272_v41  ;;  %v3281_v44 = vpop.f32.mrf.mxu0 }
 0x3f1   : > { %2279 = vst.msk [vmem:[#allocation4] sm:$0xff] %vm1603_vm3, %v2271_v51  ;;  %v1938_v14 = vpop.f32.mrf.mxu1 }
 0x3f2   : > { %v1895_v42 = vpop.f32.mrf.mxu0 }
 0x3f3   : > { %v3288_v30 = vpop.f32.mrf.mxu1 }
 0x3f4   : > { %v3282_v0 = vpop.f32.mrf.mxu0 }
 0x3f5   : > { %v2021_v4 = vpop.f32.mrf.mxu1 }
 0x3f6   : > { %v1978_v31 = vpop.f32.mrf.mxu0  ;;  %v2274_v11 = vadd.f32 %v2266_v10, %v2021_v4 }
 0x3f7   : > { %v2273_v5 = vadd.f32 %v2265_v26, %v1978_v31  ;;  %v3299_v61 = vpop.f32.mrf.mxu1 }
 0x3f8   : > { %2282 = vst.msk [vmem:[#allocation4 + $0x18] sm:$0xff] %vm1603_vm3, %v2274_v11  ;;  %v3293_v46 = vpop.f32.mrf.mxu0 }
 0x3f9   : > { %2281 = vst.msk [vmem:[#allocation4 + $0x10] sm:$0xff] %vm1603_vm3, %v2273_v5  ;;  %v2024_v54 = vpop.f32.mrf.mxu1 }
 0x3fa   : > { %v1981_v56 = vpop.f32.mrf.mxu0 }
 0x3fb   : > { %v3300_v1 = vpop.f32.mrf.mxu1 }
 0x3fc   : > { %v3294_v52 = vpop.f32.mrf.mxu0 }
 0x3fd   : > { %v2107_v6 = vpop.f32.mrf.mxu1 }
 0x3fe   : > { %v2064_v8 = vpop.f32.mrf.mxu0  ;;  %v2276_v35 = vadd.f32 %v2268_v7, %v2107_v6 }
 0x3ff   : > { %v2275_v19 = vadd.f32 %v2267_v53, %v2064_v8  ;;  %v3311_v27 = vpop.f32.mrf.mxu1 }
 0x400   : > { %2284 = vst.msk [vmem:[#allocation4 + $0x28] sm:$0xff] %vm1603_vm3, %v2276_v35  ;;  %v3305_v16 = vpop.f32.mrf.mxu0 }
 0x401   : > { %2283 = vst.msk [vmem:[#allocation4 + $0x20] sm:$0xff] %vm1603_vm3, %v2275_v19  ;;  %v2110_v60 = vpop.f32.mrf.mxu1 }
 0x402   : > { %v2067_v20 = vpop.f32.mrf.mxu0 }
 0x403   : > { %v3312_v48 = vpop.f32.mrf.mxu1 }
 0x404   : > { %v3306_v3 = vpop.f32.mrf.mxu0 }
 0x405   : > { %v2193_v9 = vpop.f32.mrf.mxu1 }
 0x406   : > { %v2150_v34 = vpop.f32.mrf.mxu0  ;;  %v2278_v12 = vadd.f32 %v2270_v21, %v2193_v9 }
 0x407   : > { %v2277_v37 = vadd.f32 %v2269_v58, %v2150_v34  ;;  %v3323_v43 = vpop.f32.mrf.mxu1 }
 0x408   : > { %2286 = vst.msk [vmem:[#allocation4 + $0x38] sm:$0xff] %vm1603_vm3, %v2278_v12  ;;  %v3317_v23 = vpop.f32.mrf.mxu0  ;;  %2290 = sbr.rel (%p3163_p11) target bundleno = 1417 (0x589), region = 60 }
 0x409   : > { %2285 = vst.msk [vmem:[#allocation4 + $0x30] sm:$0xff] %vm1603_vm3, %v2277_v37  ;;  %v2196_v25 = vpop.f32.mrf.mxu1 }
 0x40a   : > { %v2153_v32 = vpop.f32.mrf.mxu0 }
 0x40b   : > { %v3324_v38 = vpop.f32.mrf.mxu1 }
 0x40c   : > { %v3318_v57 = vpop.f32.mrf.mxu0 }
 0x40d   : > { %v2291_v13 = vld [vmem:[#allocation3] sm:$0xff]  ;;  %v3529_v62 = vld [vmem:[#allocation11 + $0x8] sm:$0xff]   ;;  %v3530_v44 = vld [vmem:[#allocation11] sm:$0xff]   ;;  %v3732_v22 = vmov 0.0   ;;  %vm3733_vm13 = vmmov 0  }
 0x40e   : > { %3537 = vrcp.f32 %v2291_v13  ;;  %3325 = vmatprep.subr.bf16.mxu0 %v3732_v22  ;;  %3331 = vmatprep.subr.bf16.mxu1 %v3732_v22  ;;  %v2296_v10 = vld [vmem:[#allocation4 + $0x18] sm:$0xff]  ;;  %v2294_v0 = vld [vmem:[#allocation4 + $0x8] sm:$0xff]  ;;  %v2297_v50 = vld [vmem:[#allocation4 + $0x20] sm:$0xff] }
 0x40f   : > { %3326 = vmatpush3.bf16.msra.mxu0 %v3529_v62  ;;  %3332 = vmatpush3.bf16.msra.mxu1 %v3530_v44  ;;  %v2298_v46 = vld [vmem:[#allocation4 + $0x28] sm:$0xff]  ;;  %v2300_v18 = vld [vmem:[#allocation4 + $0x38] sm:$0xff] }
 0x410   : > { %3327 = vmatprep.mubr.msk.bf16.mxu0 %vm3733_vm13, %v3732_v22  ;;  %3333 = vmatprep.mubr.msk.bf16.mxu1 %vm3733_vm13, %v3732_v22  ;;  %v2299_v60 = vld [vmem:[#allocation4 + $0x30] sm:$0xff] }
 0x411   : > { %3337 = vmatprep.subr.bf16.mxu0 %v3732_v22  ;;  %3343 = vmatprep.subr.bf16.mxu1 %v3732_v22 }
 0x41b   : > { %v3538_v17 = vpop.eup %3537 }
 0x41c   : > { %v2318_v33 = vrot.slane %v3538_v17, %v4707_v49  ;;  %v2304_v36 = vrot.slane %v3538_v17, %v4704_v29  ;;  %v2325_v41 = vrot.slane %v3538_v17, %v4712_v55  ;;  %v2311_v51 = vrot.slane %v3538_v17, %v4702_v28  ;;  %v2295_v49 = vld [vmem:[#allocation4 + $0x10] sm:$0xff]  ;;  %v2293_v55 = vld [vmem:[#allocation4] sm:$0xff] }
 0x41d   : > { %v2339_v24 = vrot.slane %v3538_v17, %v4718_v47  ;;  %v2332_v14 = vrot.slane %v3538_v17, %v4714_v40  ;;  %v2353_v28 = vrot.slane %v3538_v17, %v4724_v45  ;;  %v2346_v29 = vrot.slane %v3538_v17, %v4720_v15 }
 0x41e   : > { %2320 = vbcast.lane.b32.xlu1 %v2318_v33, 256  ;;  %2306 = vbcast.lane.b32.xlu0 %v2304_v36, 256 }
 0x422   : > { %2327 = vbcast.lane.b32.xlu1 %v2325_v41, 256  ;;  %2313 = vbcast.lane.b32.xlu0 %v2311_v51, 256 }
 0x426   : > { %2341 = vbcast.lane.b32.xlu1 %v2339_v24, 256  ;;  %2334 = vbcast.lane.b32.xlu0 %v2332_v14, 256 }
 0x42a   : > { %2355 = vbcast.lane.b32.xlu1 %v2353_v28, 256  ;;  %2348 = vbcast.lane.b32.xlu0 %v2346_v29, 256 }
 0x490   : > { %v2321_v40 = vpop.permute.xlu1 %2320  ;;  %v2307_v47 = vpop.permute.xlu0 %2306 }
 0x491   : > { %v2359_v42 = vmul.f32 %v2321_v40, %v2295_v49  ;;  %v2357_v30 = vmul.f32 %v2307_v47, %v2293_v55 }
 0x493   : > { %v2367_v26 = vpack.c.bf16 %v2359_v42, %v2359_v42  ;;  %v2365_v4 = vpack.c.bf16 %v2357_v30, %v2357_v30 }
 0x494   : > { %v2328_v31 = vpop.permute.xlu1 %2327  ;;  %v2314_v45 = vpop.permute.xlu0 %2313 }
 0x495   : > { %v4847_v11 = vunpack.c.l.b16 %v2367_v26  ;;  %v4849_v15 = vunpack.c.l.b16 %v2365_v4  ;;  %v2360_v5 = vmul.f32 %v2328_v31, %v2296_v10  ;;  %v2358_v61 = vmul.f32 %v2314_v45, %v2294_v0 }
 0x497   : > { %v2368_v54 = vpack.c.bf16 %v2360_v5, %v2360_v5  ;;  %v2366_v63 = vpack.c.bf16 %v2358_v61, %v2358_v61  ;;  %v2394_v56 = vrot.slane %v4849_v15, 1  ;;  %v2396_v1 = vrot.slane %v4847_v11, 7 }
 0x498   : > { %v2342_v7 = vpop.permute.xlu1 %2341  ;;  %v2335_v52 = vpop.permute.xlu0 %2334  ;;  %v2460_v53 = vrot.slane %v4847_v11, 6  ;;  %v2525_v6 = vrot.slane %v4849_v15, 2  ;;  %v2593_v8 = vrot.slane %v4849_v15, 3  ;;  %v2596_v35 = vrot.slane %v4847_v11, 1 }
 0x499   : > { %v4857_v19 = vunpack.c.l.b16 %v2368_v54  ;;  %v4859_v27 = vunpack.c.l.b16 %v2366_v63  ;;  %v2362_v16 = vmul.f32 %v2342_v7, %v2298_v46  ;;  %v2361_v39 = vmul.f32 %v2335_v52, %v2297_v50 }
 0x49a   : > { %v2661_v2 = vrot.slane %v4849_v15, 4  ;;  %v2664_v59 = vrot.slane %v4847_v11, 2  ;;  %v2729_v20 = vrot.slane %v4849_v15, 5  ;;  %v2732_v48 = vrot.slane %v4847_v11, 3 }
 0x49b   : > { %v2370_v21 = vpack.c.bf16 %v2362_v16, %v2362_v16  ;;  %v2369_v3 = vpack.c.bf16 %v2361_v39, %v2361_v39  ;;  %v2395_v58 = vsel %vm1670_vm4, %v4859_v27, %v2394_v56  ;;  %v2398_v9 = vrot.slane %v4857_v19, 6  ;;  %v3532_v16 = vld [vmem:[#allocation11 + $0x18] sm:$0xff]  }
 0x49c   : > { %v2356_v34 = vpop.permute.xlu1 %2355  ;;  %v2349_v12 = vpop.permute.xlu0 %2348  ;;  %v2397_v37 = vsel %vm1672_vm5, %v2396_v1, %v2395_v58  ;;  %v2458_v43 = vrot.slane %v4859_v27, 7  ;;  %v2462_v23 = vrot.slane %v4857_v19, 5  ;;  %v2526_v25 = vrot.slane %v4859_v27, 1 }
 0x49d   : > { %v4872_v32 = vunpack.c.l.b16 %v2370_v21  ;;  %v4874_v38 = vunpack.c.l.b16 %v2369_v3  ;;  %v2364_v57 = vmul.f32 %v2356_v34, %v2300_v18  ;;  %v2363_v13 = vmul.f32 %v2349_v12, %v2299_v60 }
 0x49e   : > { %v2399_v17 = vsel %vm1674_vm6, %v2398_v9, %v2397_v37  ;;  %v2459_v33 = vsel %vm1670_vm4, %v2458_v43, %v4849_v15  ;;  %v2527_v36 = vsel %vm1670_vm4, %v2526_v25, %v2525_v6  ;;  %v2529_v41 = vrot.slane %v4857_v19, 7  ;;  %v3531_v6 = vld [vmem:[#allocation11 + $0x10] sm:$0xff]  }
 0x49f   : > { %v2372_v51 = vpack.c.bf16 %v2364_v57, %v2364_v57  ;;  %v2371_v62 = vpack.c.bf16 %v2363_v13, %v2363_v13  ;;  %v2400_v44 = vrot.slane %v4874_v38, 5  ;;  %v2402_v24 = vrot.slane %v4872_v32, 4 }
 0x4a0   : > { %v2461_v14 = vsel %vm1672_vm5, %v2460_v53, %v2459_v33  ;;  %v2464_v28 = vrot.slane %v4874_v38, 4  ;;  %v2466_v29 = vrot.slane %v4872_v32, 3  ;;  %v2528_v49 = vsel %vm1672_vm5, %v4847_v11, %v2527_v36 }
 0x4a1   : > { %v4888_v55 = vunpack.c.l.b16 %v2372_v51  ;;  %v4890_v40 = vunpack.c.l.b16 %v2371_v62  ;;  %v2401_v47 = vsel %vm1676_vm7, %v2400_v44, %v2399_v17  ;;  %v2463_v42 = vsel %vm1674_vm6, %v2462_v23, %v2461_v14 }
 0x4a2   : > { %v2403_v30 = vsel %vm1678_vm8, %v2402_v24, %v2401_v47  ;;  %v2465_v10 = vsel %vm1676_vm7, %v2464_v28, %v2463_v42  ;;  %v2530_v0 = vsel %vm1674_vm6, %v2529_v41, %v2528_v49  ;;  %v2531_v26 = vrot.slane %v4874_v38, 6  ;;  %v3533_v42 = vld [vmem:[#allocation11 + $0x20] sm:$0xff]  }
 0x4a3   : > { %v2404_v4 = vrot.slane %v4890_v40, 3  ;;  %v2406_v31 = vrot.slane %v4888_v55, 2  ;;  %v2467_v45 = vsel %vm1678_vm8, %v2466_v29, %v2465_v10  ;;  %v2468_v5 = vrot.slane %v4890_v40, 2 }
 0x4a4   : > { %v2470_v61 = vrot.slane %v4888_v55, 1  ;;  %v2532_v46 = vsel %vm1676_vm7, %v2531_v26, %v2530_v0  ;;  %v2533_v50 = vrot.slane %v4872_v32, 5  ;;  %v2535_v54 = vrot.slane %v4890_v40, 4 }
 0x4a5   : > { %v2405_v63 = vsel %vm1680_vm9, %v2404_v4, %v2403_v30  ;;  %v2469_v56 = vsel %vm1680_vm9, %v2468_v5, %v2467_v45  ;;  %v2537_v1 = vrot.slane %v4888_v55, 3  ;;  %v2594_v7 = vrot.slane %v4859_v27, 2  ;;  %v3534_v30 = vld [vmem:[#allocation11 + $0x28] sm:$0xff]  }
 0x4a6   : > { %v2407_v52 = vsel %vm1682_vm10, %v2406_v31, %v2405_v63  ;;  %v2471_v53 = vsel %vm1682_vm10, %v2470_v61, %v2469_v56  ;;  %v2534_v39 = vsel %vm1678_vm8, %v2533_v50, %v2532_v46  ;;  %v2599_v18 = vrot.slane %v4874_v38, 7 }
 0x4a7   : > { %v2408_v60 = vpack.c.b16 %v2407_v52, %v2407_v52  ;;  %v2472_v21 = vpack.c.b16 %v2471_v53, %v2471_v53  ;;  %v2536_v3 = vsel %vm1680_vm9, %v2535_v54, %v2534_v39  ;;  %v2595_v58 = vsel %vm1670_vm4, %v2594_v7, %v2593_v8 }
 0x4a8   : > { %v2538_v9 = vsel %vm1682_vm10, %v2537_v1, %v2536_v3  ;;  %v2597_v34 = vsel %vm1672_vm5, %v2596_v35, %v2595_v58  ;;  %v2601_v12 = vrot.slane %v4872_v32, 6  ;;  %v2603_v37 = vrot.slane %v4890_v40, 5  ;;  %v3535_v3 = vld [vmem:[#allocation11 + $0x30] sm:$0xff]   ;;  %v3536_v58 = vld [vmem:[#allocation11 + $0x38] sm:$0xff]  }
 0x4a9   : > { %3328 = vmatmul.mubr.msk.bf16.vlgmr.msra.gmra.mxu0 %vm1603_vm3, %v2408_v60  ;;  %3334 = vmatmul.mubr.msk.bf16.vlgmr.msra.gmra.mxu1 %vm1603_vm3, %v2472_v21  ;;  %v2539_v43 = vpack.c.b16 %v2538_v9, %v2538_v9  ;;  %v2598_v23 = vsel %vm1674_vm6, %v4857_v19, %v2597_v34  ;;  %v2605_v8 = vrot.slane %v4888_v55, 4  ;;  %v2662_v25 = vrot.slane %v4859_v27, 3 }
 0x4aa   : > { %3338 = vmatpush3.bf16.msra.mxu0 %v3531_v6  ;;  %3344 = vmatpush3.bf16.msra.mxu1 %v3532_v16  ;;  %v2600_v35 = vsel %vm1676_vm7, %v2599_v18, %v2598_v23  ;;  %v2666_v57 = vrot.slane %v4857_v19, 1  ;;  %v2669_v13 = vrot.slane %v4872_v32, 7  ;;  %v2671_v17 = vrot.slane %v4890_v40, 6 }
 0x4ab   : > { %3339 = vmatprep.mubr.msk.bf16.mxu0 %vm3733_vm13, %v3732_v22  ;;  %3345 = vmatprep.mubr.msk.bf16.mxu1 %vm3733_vm13, %v3732_v22  ;;  %v2602_v33 = vsel %vm1678_vm8, %v2601_v12, %v2600_v35  ;;  %v2663_v36 = vsel %vm1670_vm4, %v2662_v25, %v2661_v2  ;;  %v2673_v41 = vrot.slane %v4888_v55, 5  ;;  %v2730_v51 = vrot.slane %v4859_v27, 4 }
 0x4ac   : > { %3349 = vmatprep.subr.bf16.mxu0 %v3732_v22  ;;  %v2604_v62 = vsel %vm1680_vm9, %v2603_v37, %v2602_v33  ;;  %3355 = vmatprep.subr.bf16.mxu1 %v3732_v22  ;;  %v2665_v44 = vsel %vm1672_vm5, %v2664_v59, %v2663_v36  ;;  %v2734_v24 = vrot.slane %v4857_v19, 2  ;;  %v2736_v14 = vrot.slane %v4874_v38, 1 }
 0x4ad   : > { %v2606_v2 = vsel %vm1682_vm10, %v2605_v8, %v2604_v62  ;;  %v2667_v28 = vsel %vm1674_vm6, %v2666_v57, %v2665_v44  ;;  %v2731_v29 = vsel %vm1670_vm4, %v2730_v51, %v2729_v20  ;;  %v2739_v49 = vrot.slane %v4890_v40, 7 }
 0x4ae   : > { %v2607_v47 = vpack.c.b16 %v2606_v2, %v2606_v2  ;;  %v2668_v59 = vsel %vm1676_vm7, %v4874_v38, %v2667_v28  ;;  %v2733_v10 = vsel %vm1672_vm5, %v2732_v48, %v2731_v29  ;;  %v2741_v0 = vrot.slane %v4888_v55, 6 }
 0x4af   : > { %v2670_v26 = vsel %vm1678_vm8, %v2669_v13, %v2668_v59  ;;  %v2735_v4 = vsel %vm1674_vm6, %v2734_v24, %v2733_v10  ;;  %v2797_v20 = vrot.slane %v4849_v15, 6  ;;  %v2798_v31 = vrot.slane %v4859_v27, 5 }
 0x4b0   : > { %v2672_v45 = vsel %vm1680_vm9, %v2671_v17, %v2670_v26  ;;  %v2737_v5 = vsel %vm1676_vm7, %v2736_v14, %v2735_v4  ;;  %v2800_v61 = vrot.slane %v4847_v11, 4  ;;  %v2802_v46 = vrot.slane %v4857_v19, 3 }
 0x4b1   : > { %3340 = vmatmul.mubr.msk.bf16.vlgmr.msra.gmra.mxu0 %vm1603_vm3, %v2539_v43  ;;  %3346 = vmatmul.mubr.msk.bf16.vlgmr.msra.gmra.mxu1 %vm1603_vm3, %v2607_v47  ;;  %v2738_v48 = vsel %vm1678_vm8, %v4872_v32, %v2737_v5  ;;  %v2799_v50 = vsel %vm1670_vm4, %v2798_v31, %v2797_v20  ;;  %v2804_v54 = vrot.slane %v4874_v38, 2  ;;  %v2806_v1 = vrot.slane %v4872_v32, 1 }
 0x4b2   : > { %3350 = vmatpush3.bf16.msra.mxu0 %v3533_v42  ;;  %3356 = vmatpush3.bf16.msra.mxu1 %v3534_v30  ;;  %v2740_v63 = vsel %vm1680_vm9, %v2739_v49, %v2738_v48  ;;  %v2801_v56 = vsel %vm1672_vm5, %v2800_v61, %v2799_v50  ;;  %v2674_v7 = vsel %vm1682_vm10, %v2673_v41, %v2672_v45  ;;  %v2865_v16 = vrot.slane %v4849_v15, 7 }
 0x4b3   : > { %3351 = vmatprep.mubr.msk.bf16.mxu0 %vm3733_vm13, %v3732_v22  ;;  %3357 = vmatprep.mubr.msk.bf16.mxu1 %vm3733_vm13, %v3732_v22  ;;  %v2803_v52 = vsel %vm1674_vm6, %v2802_v46, %v2801_v56  ;;  %v2742_v53 = vsel %vm1682_vm10, %v2741_v0, %v2740_v63  ;;  %v2866_v39 = vrot.slane %v4859_v27, 6  ;;  %v2868_v18 = vrot.slane %v4847_v11, 5 }
 0x4b4   : > { %3361 = vmatprep.subr.bf16.mxu0 %v3732_v22  ;;  %3367 = vmatprep.subr.bf16.mxu1 %v3732_v22  ;;  %v2805_v6 = vsel %vm1676_vm7, %v2804_v54, %v2803_v52  ;;  %v2870_v60 = vrot.slane %v4857_v19, 4  ;;  %v2872_v21 = vrot.slane %v4874_v38, 3  ;;  %v2874_v12 = vrot.slane %v4872_v32, 2  ;;  %v3180_v54 = vld [vmem:[%s5088_s7] ss:$0 sm:$0xff] }
 0x4b5   : > { %v2807_v9 = vsel %vm1678_vm8, %v2806_v1, %v2805_v6  ;;  %v2867_v34 = vsel %vm1670_vm4, %v2866_v39, %v2865_v16  ;;  %v2675_v37 = vpack.c.b16 %v2674_v7, %v2674_v7  ;;  %v2743_v43 = vpack.c.b16 %v2742_v53, %v2742_v53 }
 0x4b6   : > { %v2869_v15 = vsel %vm1672_vm5, %v2868_v18, %v2867_v34  ;;  %v2876_v27 = vrot.slane %v4890_v40, 1  ;;  %v2809_v11 = vrot.slane %v4888_v55, 7  ;;  %v2808_v38 = vsel %vm1680_vm9, %v4890_v40, %v2807_v9 }
 0x4b7   : > { %v2871_v19 = vsel %vm1674_vm6, %v2870_v60, %v2869_v15 }
 0x4b8   : > { %v2873_v23 = vsel %vm1676_vm7, %v2872_v21, %v2871_v19  ;;  %v2810_v25 = vsel %vm1682_vm10, %v2809_v11, %v2808_v38 }
 0x4b9   : > { %3352 = vmatmul.mubr.msk.bf16.vlgmr.msra.gmra.mxu0 %vm1603_vm3, %v2675_v37  ;;  %3358 = vmatmul.mubr.msk.bf16.vlgmr.msra.gmra.mxu1 %vm1603_vm3, %v2743_v43  ;;  %v2875_v32 = vsel %vm1678_vm8, %v2874_v12, %v2873_v23  ;;  %v2811_v40 = vpack.c.b16 %v2810_v25, %v2810_v25 }
 0x4ba   : > { %3362 = vmatpush3.bf16.msra.mxu0 %v3535_v3  ;;  %3368 = vmatpush3.bf16.msra.mxu1 %v3536_v58  ;;  %v2877_v8 = vsel %vm1680_vm9, %v2876_v27, %v2875_v32 }
 0x4bb   : > { %3363 = vmatprep.mubr.msk.bf16.mxu0 %vm3733_vm13, %v3732_v22  ;;  %3369 = vmatprep.mubr.msk.bf16.mxu1 %vm3733_vm13, %v3732_v22  ;;  %v2878_v35 = vsel %vm1682_vm10, %v4888_v55, %v2877_v8 }
 0x4bc   : > { %v2879_v57 = vpack.c.b16 %v2878_v35, %v2878_v35 }
 0x4c1   : > { %3364 = vmatmul.mubr.msk.bf16.vlgmr.msra.gmra.mxu0 %vm1603_vm3, %v2811_v40  ;;  %3370 = vmatmul.mubr.msk.bf16.vlgmr.msra.gmra.mxu1 %vm1603_vm3, %v2879_v57 }
 0x569   : > { %v2452_v13 = vpop.f32.mrf.mxu0  ;;  %v2516_v17 = vpop.f32.mrf.mxu1 }
 0x56a   : > { %v2517_v28 = vadd.f32 %v2516_v17, %v2452_v13 }
 0x56b   : > { %v3329_v33 = vpop.f32.mrf.mxu0  ;;  %v3335_v36 = vpop.f32.mrf.mxu1 }
 0x56d   : > { %v2455_v41 = vpop.f32.mrf.mxu0  ;;  %v2519_v51 = vpop.f32.mrf.mxu1 }
 0x56f   : > { %v3330_v22 = vpop.f32.mrf.mxu0  ;;  %v3336_v62 = vpop.f32.mrf.mxu1 }
 0x571   : > { %v2583_v44 = vpop.f32.mrf.mxu0  ;;  %v2651_v24 = vpop.f32.mrf.mxu1 }
 0x572   : > { %v2589_v49 = vadd.f32 %v2583_v44, %v2517_v28 }
 0x573   : > { %v3341_v14 = vpop.f32.mrf.mxu0  ;;  %v3347_v2 = vpop.f32.mrf.mxu1 }
 0x574   : > { %v2657_v10 = vadd.f32 %v2651_v24, %v2589_v49 }
 0x575   : > { %v2586_v55 = vpop.f32.mrf.mxu0  ;;  %v2654_v29 = vpop.f32.mrf.mxu1 }
 0x577   : > { %v3342_v47 = vpop.f32.mrf.mxu0  ;;  %v3348_v42 = vpop.f32.mrf.mxu1 }
 0x579   : > { %v2719_v30 = vpop.f32.mrf.mxu0  ;;  %v2787_v59 = vpop.f32.mrf.mxu1 }
 0x57a   : > { %v2725_v4 = vadd.f32 %v2719_v30, %v2657_v10 }
 0x57b   : > { %v3353_v0 = vpop.f32.mrf.mxu0  ;;  %v3359_v26 = vpop.f32.mrf.mxu1 }
 0x57c   : > { %v2793_v61 = vadd.f32 %v2787_v59, %v2725_v4 }
 0x57d   : > { %v2722_v20 = vpop.f32.mrf.mxu0  ;;  %v2790_v31 = vpop.f32.mrf.mxu1 }
 0x57f   : > { %v3354_v45 = vpop.f32.mrf.mxu0  ;;  %v3360_v5 = vpop.f32.mrf.mxu1 }
 0x581   : > { %v2855_v46 = vpop.f32.mrf.mxu0  ;;  %v2923_v48 = vpop.f32.mrf.mxu1 }
 0x582   : > { %v2861_v50 = vadd.f32 %v2855_v46, %v2793_v61 }
 0x583   : > { %v3365_v63 = vpop.f32.mrf.mxu0  ;;  %v3371_v56 = vpop.f32.mrf.mxu1 }
 0x584   : > { %v2929_v1 = vadd.f32 %v2923_v48, %v2861_v50 }
 0x585   : > { %v2858_v7 = vpop.f32.mrf.mxu0  ;;  %v2926_v52 = vpop.f32.mrf.mxu1 }
 0x586   : > { %v2937_v53 = vadd.f32 %v3180_v54, %v2929_v1 }
 0x587   : > { %v3366_v6 = vpop.f32.mrf.mxu0  ;;  %v3372_v16 = vpop.f32.mrf.mxu1 }
 0x588   : > { %2938 = vst.msk [vmem:[%s5250_s11] sm:$0xff] %vm1079_vm2, %v2937_v53 }
 0x589 PF: > { %s3182_s30 = sshll.u32 %s3703_s20, 7  ;;  %s5251_s25 = sld [smem:[#allocation74_spill]] }
 0x58a   : > { %s5252_s15 = scalar_lea.vmem [#allocation13], %s3942_s21  ;;  %s5253_s10 = sand.u32 1, %s3679_s14  }
 0x58b   : > { %s2953_s13 = sshll.u32 %s5252_s15, 4  ;;  %s2940_s8 = scalar_lea.sflag [#allocation10], %s5253_s10  ;;  %s2954_s13 = int_to_ptr.vmem [resolvable:$true] %s2953_s13 }
 0x58c   : > { %s3589_s18 = scalar_lea.vmem %s2954_s13, 128  ;;  %p5254_p3 = scmp.ne.s32.totalorder %s5156_s0, 0 }
 0x58d   : > { %p3590_p12 = scmp.ne.s32.totalorder %s2954_s13, %s3589_s18  ;;  %s3734_s9 = smov [#allocation13]  }
 0x58e   : > { %s3593_s28 = sshll.u32 %s3734_s9, 4  ;;  %s3594_s28 = int_to_ptr.vmem [resolvable:$false] %s3593_s28 }
 0x58f   : > { %s2951_s29 = scalar_lea.hbm %s5251_s25, %s3182_s30  ;;  %p3591_p13 = pnand %p3590_p12, %p5254_p3 }
 0x590   : > { %s3595_s16 = scalar_lea.vmem %s3594_s28, 256  ;;  %p3596_p8 = scmp.lt.s32.totalorder %s2954_s13, %s3594_s28 }
 0x591   : > { %p3592_p2 = pneg %p3591_p13  ;;  %p3597_p0 = scmp.lt.s32.totalorder %s3595_s16, %s3589_s18 }
 0x593   : > { %p3598_p1 = por %p3597_p0, %p3596_p8 }
 0x595   : > { %p3599_p4 = pnand %p3598_p1, %p3592_p2 }
 0x597   : > { %3602 = shalt.err (!%p3599_p4)
}
 0x598   : > { %s3603_s20 = scalar_lea.hbm %s2951_s29, 128  ;;  %s3607_s2 = scalar_lea.hbm %s5251_s25, 256 }
 0x599   : > { %p3604_p5 = scmp.ne.s32.totalorder %s2951_s29, %s3603_s20  ;;  %p3608_p9 = scmp.lt.s32.totalorder %s2951_s29, %s5251_s25 }
 0x59a   : > { %p3609_p10 = scmp.lt.s32.totalorder %s3607_s2, %s3603_s20 }
 0x59b   : > { %p3605_p6 = pnand %p3604_p5, %p5254_p3 }
 0x59c   : > { %p3610_p11 = por %p3609_p10, %p3608_p9 }
 0x59d   : > { %p3606_p7 = pneg %p3605_p6 }
 0x59f   : > { %p3611_p12 = pnand %p3610_p11, %p3606_p7 }
 0x5a1   : > { %3614 = shalt.err (!%p3611_p12)
}
 0x5a2   : > { %3389 = dma.vmem_to_hbm [thread:$0]  (%p5254_p3), %s2954_s13, 128, %s2951_s29, %s2940_s8  }
 0x5a3 PF: > { %s5255_s22 = sld [smem:[#allocation29_spill]]  ;;  %p3401_p13 = scmp.ge.s32.totalorder %s3715_s23, 2 }
 0x5a4   : > { %s2965_s19 = sand.u32 1, %s3675_s1  }
 0x5a5   : > { %s2966_s27 = scalar_lea.sflag [#allocation10], %s2965_s19 }
 0x5a9   : > { %p5256_p2 = scmp.ne.s32.totalorder %s5255_s22, 0 }
 0x5ab   : > { %p3396_p8 = pnand %p3401_p13, %p5256_p2 }
 0x5ad   : > { %p3397_p0 = pneg %p3396_p8 }
 0x5af   : > { %3670 = dma.done.wait (%p3397_p0), %s2966_s27, 128  }
 0x5b0   : > { %3672 = vsyncadd (%p3397_p0), %s2966_s27, 4294967168  ;;  %s35_s23 = sadd.s32 1, %s3715_s23   ;;  %s5257_s11 = sld [smem:[#allocation21_spill]] }
 0x5b1   : > { %p32_p1 = scmp.ge.s32.totalorder %s35_s23, 6   ;;  %s5258_s15 = sld [smem:[#allocation27_spill]] }
 0x5b2   : > { %s5259_s0 = sld [smem:[#allocation22_spill]]  ;;  %s5265_s1 = smov %s3679_s14 }
 0x5b3   : > { %s5260_s18 = sld [smem:[#allocation28_spill]]  ;;  %s5267_s16 = smov %s3691_s17 }
 0x5b4   : > { %s5261_s19 = sld [smem:[#allocation23_spill]]  ;;  %34 = sbr.rel (!%p32_p1) target bundleno = 37 (0x25), region = 117 }
 0x5b5   : > { %s5262_s20 = sld [smem:[#allocation24_spill]] }
 0x5b6   : > { %s5263_s21 = sld [smem:[#allocation25_spill]]  ;;  %s5266_s14 = smov %s5257_s11 }
 0x5b7   : > { %s5264_s22 = sld [smem:[#allocation26_spill]] }
 0x5b8   : > { %s5268_s17 = smov %s5259_s0 }
 0x5b9   :  { %2971 = vsyncpa [#allocation9], 1 }
 0x5ba   :  { %2973 = vsyncpa [#allocation9 + $0x1], 1 }
 0x5bb   :  { %2974 = vsyncpa [#allocation12], 1 }
 0x5bc   :  { %2975 = vsyncpa [#allocation10], 1 }
 0x5bd   :  { %2977 = vsyncpa [#allocation10 + $0x1], 1 }

</bundles_post_ra>
